<compile_context>
chip_gen: v6e
topology: v6e:2x2x1
jax: 0.10.0
libtpu: 0.0.40
codegen_flags: <defaults>
</compile_context>

<pallas_src>
import math
import numpy as np

import jax
import jax.numpy as jnp
from jax.experimental import pallas as pl
from jax.experimental.pallas import tpu as pltpu


# ---------------- Gaussian window (trace-time numpy constants) ---------------

def _gaussian_1d(window_size: int, sigma: float = 1.5) -> np.ndarray:
    g = np.array(
        [math.exp(-((x - window_size // 2) ** 2) / (2.0 * sigma ** 2))
         for x in range(window_size)],
        dtype=np.float64,
    )
    return (g / g.sum()).astype(np.float32)


def _create_window_2d(window_size: int, sigma: float = 1.5) -> np.ndarray:
    g = _gaussian_1d(window_size, sigma)
    return np.outer(g, g).astype(np.float32)  # used only by the numpy ref


def _banded_gh(g1d: np.ndarray, w: int, w_out: int, fold: int) -> np.ndarray:
    """(fold*w, fold*w_out) block-diagonal banded matrix: multiplying a row of
    `fold` side-by-side plane rows by this matrix performs the per-plane
    horizontal valid correlation with the 1D Gaussian (no cross-plane mixing)."""
    k = g1d.shape[0]
    gh = np.zeros((w, w_out), np.float32)
    for j in range(w_out):
        gh[j:j + k, j] = g1d
    bd = np.zeros((fold * w, fold * w_out), np.float32)
    for p in range(fold):
        bd[p * w:(p + 1) * w, p * w_out:(p + 1) * w_out] = gh
    return bd


# ---------------- Pallas kernel ----------------------------------------------

def _make_ssim_kernel(g1d: np.ndarray, h_out: int, strip_h: int):
    gvals = [float(v) for v in g1d]     # 11 taps baked in as python constants
    k = len(gvals)
    n_strips = -(-h_out // strip_h)

    def kernel(l_ref, x1_ref, x2_ref, gh_ref, out_ref):
        # l_ref   : (1,) f32 SMEM        scalar-prefetched dynamic range L
        # x1_ref  : (tile_g, H, fold*W)  VMEM (native float dtype)
        # x2_ref  : (tile_g, H, fold*W)  VMEM
        # gh_ref  : (fold*W, fold*w_out) f32 VMEM (block-diag banded Gaussian)
        # out_ref : (1, 1) f32 SMEM  ->  per-grid-step partial sum of cs_map
        tile_g = x1_ref.shape[0]
        fw = x1_ref.shape[2]
        fwo = gh_ref.shape[1]

        L = l_ref[0]
        c2 = (0.03 * L) * (0.03 * L)

        gh = gh_ref[...]
        total = jnp.zeros((), jnp.float32)

        for s in range(n_strips):
            r0 = s * strip_h
            rows = min(strip_h, h_out - r0)

            # Load the strip (+ (k-1)-row halo) once; the 11 shifted tap views
            # below are derived from this value, not re-read from the ref.
            x1s = x1_ref[:, r0:r0 + rows + k - 1, :].astype(jnp.float32)
            x2s = x2_ref[:, r0:r0 + rows + k - 1, :].astype(jnp.float32)

            acc_shape = (tile_g, rows, fw)
            v_mu1 = jnp.zeros(acc_shape, jnp.float32)
            v_mu2 = jnp.zeros(acc_shape, jnp.float32)
            v_11 = jnp.zeros(acc_shape, jnp.float32)
            v_22 = jnp.zeros(acc_shape, jnp.float32)
            v_12 = jnp.zeros(acc_shape, jnp.float32)

            # Vertical (sublane) Gaussian pass, squared/cross moments fused in:
            # gs1/gs2 reused -> 10 VALU ops per tap.
            for dy in range(k):
                g = gvals[dy]
                s1 = x1s[:, dy:dy + rows, :]
                s2 = x2s[:, dy:dy + rows, :]
                gs1 = g * s1
                gs2 = g * s2
                v_mu1 = v_mu1 + gs1
                v_mu2 = v_mu2 + gs2
                v_11 = v_11 + gs1 * s1
                v_22 = v_22 + gs2 * s2
                v_12 = v_12 + gs1 * s2

            # Horizontal (lane) Gaussian pass on the MXU: one matmul per moment
            # against the block-diagonal banded window, full f32 precision.
            def hconv(v):
                r = jnp.dot(v.reshape(tile_g * rows, fw), gh,
                            precision=jax.lax.Precision.HIGHEST,
                            preferred_element_type=jnp.float32)
                return r.reshape(tile_g, rows, fwo)

            mu1 = hconv(v_mu1)
            mu2 = hconv(v_mu2)
            e11 = hconv(v_11)
            e22 = hconv(v_22)
            e12 = hconv(v_12)

            sigma1_sq = e11 - mu1 * mu1
            sigma2_sq = e22 - mu2 * mu2
            sigma12 = e12 - mu1 * mu2

            v1 = 2.0 * sigma12 + c2
            v2 = sigma1_sq + sigma2_sq + c2

            # EUP approximate reciprocal + one Newton refinement (~f32 level);
            # keeps the per-element divide off the VALU.
            r = pl.reciprocal(v2, approx=True)
            r = r * (2.0 - v2 * r)
            total = total + jnp.sum(v1 * r)

        out_ref[0, 0] = total

    return kernel


# ---------------- sizing helpers ----------------------------------------------

def _vmem_capacity_bytes() -> int:
    try:
        return int(pltpu.get_tpu_info().vmem_capacity_bytes)
    except Exception:
        return 64 * 1024 * 1024          # conservative (v7x-sized) fallback


def _pick_fold(nc: int, w: int, max_lanes: int = 256) -> int:
    """Largest divisor f of nc with f*w <= max_lanes: lane-dense repack for
    small W (falls back to 1 when W is already lane-dense)."""
    best = 1
    for d in range(1, nc + 1):
        if nc % d == 0 and d * w <= max_lanes:
            best = d
    return best


def _pick_tile_g(num_groups: int, group_bytes: int, strip_bytes: int,
                 vmem_cap: int, max_tile_g=None) -> int:
    """Folded plane-groups per grid step.

    Caps: (a) per-input block ~ vmem_cap/20 (~6.4 MiB on 128 MiB v5e/v6e,
    ~3.2 MiB on 64 MiB v7x), so 2 inputs x 2 pipeline buffers + intermediates
    stay well under the limit; (b) per-strip working set <= ~1 MiB so strip
    accumulators don't thrash VMEM.  Prefers an even number of grid steps
    (v7x 2-TC megacore) when that costs at most 2x in block size."""
    block_target = max(group_bytes, vmem_cap // 20)
    limit = max(1, block_target // group_bytes)
    limit = min(limit, max(1, (1 << 20) // max(strip_bytes, 1)))
    if max_tile_g is not None:
        limit = min(limit, max_tile_g)
    divisors = [d for d in range(1, num_groups + 1)
                if num_groups % d == 0 and d <= limit]
    best = max(divisors)
    for d in sorted(divisors, reverse=True):
        if (num_groups // d) % 2 == 0 and 2 * d >= best:
            return d
    return best


# ---------------- wrapper ------------------------------------------------------

def ssim_cs(img1: jax.Array, img2: jax.Array, window_size: int = 11,
            val_range=None, *, strip_h: int = 8, max_tile_g=None) -> jax.Array:
    """Returns the scalar `cs`, exactly as SSIM.forward(img1, img2) does."""
    n, c, h, w = img1.shape
    assert img2.shape == img1.shape
    k = window_size
    h_out, w_out = h - k + 1, w - k + 1
    assert h_out > 0 and w_out > 0, "window larger than image"

    g1d = _gaussian_1d(k, 1.5)

    # Keep floating inputs in their native dtype (cast in-kernel); other dtypes
    # go through f32 in the wrapper.
    if not jnp.issubdtype(img1.dtype, jnp.floating):
        img1 = img1.astype(jnp.float32)
    img2 = img2.astype(img1.dtype)

    nc = n * c
    fold = _pick_fold(nc, w)
    num_groups = nc // fold
    fw, fwo = fold * w, fold * w_out

    def repack(x):
        # (N,C,H,W) -> (G, H, fold*W): fold planes side-by-side along lanes.
        x = x.reshape(num_groups, fold, h, w)
        x = jnp.transpose(x, (0, 2, 1, 3))
        return x.reshape(num_groups, h, fw)

    x1 = repack(img1)
    x2 = repack(img2)

    # Dynamic-range decision (PyTorch semantics) -> C2 inside the kernel.
    # Passing a static val_range avoids the extra full pass over img1.
    if val_range is None:
        max_val = jnp.where(jnp.max(img1).astype(jnp.float32) > 128.0, 255.0, 1.0)
        min_val = jnp.where(jnp.min(img1).astype(jnp.float32) < -0.5, -1.0, 0.0)
        l_arr = (max_val - min_val).astype(jnp.float32).reshape(1)
    else:
        l_arr = jnp.full((1,), float(val_range), jnp.float32)

    gh_bd = jnp.asarray(_banded_gh(g1d, w, w_out, fold))

    strip_h = max(1, min(strip_h, h_out))
    vmem_cap = _vmem_capacity_bytes()
    group_bytes = h * fw * 4
    strip_bytes = 4 * (fw * (5 * strip_h + 2 * (strip_h + k - 1))
                       + 10 * strip_h * fwo)
    tile_g = _pick_tile_g(num_groups, group_bytes, strip_bytes, vmem_cap,
                          max_tile_g)
    num_tiles = num_groups // tile_g

    kernel = _make_ssim_kernel(g1d, h_out, strip_h)

    partials = pl.pallas_call(
        kernel,
        out_shape=jax.ShapeDtypeStruct((num_tiles, 1), jnp.float32),
        grid_spec=pltpu.PrefetchScalarGridSpec(
            num_scalar_prefetch=1,
            grid=(num_tiles,),
            in_specs=[
                pl.BlockSpec((tile_g, h, fw), lambda i, l: (i, 0, 0)),
                pl.BlockSpec((tile_g, h, fw), lambda i, l: (i, 0, 0)),
                pl.BlockSpec((fw, fwo), lambda i, l: (0, 0)),
            ],
            out_specs=pl.BlockSpec((1, 1), lambda i, l: (i, 0),
                                   memory_space=pltpu.MemorySpace.SMEM),
        ),
        compiler_params=pltpu.CompilerParams(
            dimension_semantics=("parallel",),
            vmem_limit_bytes=min((vmem_cap * 3) // 4, 96 * 1024 * 1024),
        ),
    )(l_arr, x1, x2, gh_bd)

    return jnp.sum(partials) / float(nc * h_out * w_out)


# ---------------- numpy reference (correctness sanity check) ------------------

def _ssim_cs_ref_np(img1, img2, window_size=11):
    x1 = np.asarray(img1, np.float32)
    x2 = np.asarray(img2, np.float32)
    n, c, h, w = x1.shape
    k = window_size
    win = _create_window_2d(k, 1.5)
    ho, wo = h - k + 1, w - k + 1

    def conv(x):
        out = np.zeros((n, c, ho, wo), np.float32)
        for dy in range(k):
            for dx in range(k):
                out += win[dy, dx] * x[:, :, dy:dy + ho, dx:dx + wo]
        return out

    mu1, mu2 = conv(x1), conv(x2)
    s11 = conv(x1 * x1) - mu1 * mu1
    s22 = conv(x2 * x2) - mu2 * mu2
    s12 = conv(x1 * x2) - mu1 * mu2
    max_val = 255.0 if x1.max() > 128 else 1.0
    min_val = -1.0 if x1.min() < -0.5 else 0.0
    Lr = max_val - min_val
    C2 = (0.03 * Lr) ** 2
    return np.mean((2.0 * s12 + C2) / (s11 + s22 + C2))


# ---------------- main ---------------------------------------------------------

if __name__ == "__main__":
    key = jax.random.PRNGKey(0)
    k1, k2, k3, k4 = jax.random.split(key, 4)

    # Test 1: module-sized input (batch=2, channels=4, 16x16 spatial).
    img1 = jax.random.normal(k1, (2, 4, 16, 16), dtype=jnp.float32)
    img2 = jax.random.normal(k2, (2, 4, 16, 16), dtype=jnp.float32)
    cs = jax.block_until_ready(ssim_cs(img1, img2, window_size=11))
    cs_ref = _ssim_cs_ref_np(np.asarray(img1), np.asarray(img2), 11)
    np.testing.assert_allclose(np.asarray(cs), cs_ref, rtol=1e-4, atol=1e-5)

    # Test 2: exercises partial folding (fold < NC), multiple output-row strips
    # and more than one grid step (forced via max_tile_g=1).
    img3 = jax.random.normal(k3, (2, 3, 32, 48), dtype=jnp.float32)
    img4 = jax.random.normal(k4, (2, 3, 32, 48), dtype=jnp.float32)
    cs2 = jax.block_until_ready(ssim_cs(img3, img4, window_size=11,
                                        max_tile_g=1))
    cs2_ref = _ssim_cs_ref_np(np.asarray(img3), np.asarray(img4), 11)
    np.testing.assert_allclose(np.asarray(cs2), cs2_ref, rtol=1e-4, atol=1e-5)

    print("KERNEL_OK")
</pallas_src>

<mosaic_0001>
module attributes {stable_mosaic.version = 11 : i64} {
  func.func @kernel(%arg0: i32, %arg1: memref<1xf32, #tpu.memory_space<smem>>, %arg2: memref<1x16x128xf32, #tpu.memory_space<vmem>>, %arg3: memref<1x16x128xf32, #tpu.memory_space<vmem>>, %arg4: memref<128x48xf32, #tpu.memory_space<vmem>>, %arg5: memref<1x1xf32, #tpu.memory_space<smem>>) attributes {dimension_semantics = [#tpu.dimension_semantics<parallel>], iteration_bounds = array<i64: 1>, scalar_prefetch = 1 : i64, scratch_operands = 0 : i64, tpu.core_type = #tpu.core_type<tc>, window_params = [{transform_indices = @transform_0, window_bounds = array<i64: 1, 16, 128>}, {transform_indices = @transform_1, window_bounds = array<i64: 1, 16, 128>}, {pipeline_mode = #tpu.pipeline_mode<synchronous>, transform_indices = @transform_2, window_bounds = array<i64: 128, 48>}, {transform_indices = @transform_3, window_bounds = array<i64: 1, 1>}]} {
    %c0 = arith.constant 0 : index
    %0 = memref.load %arg1[%c0] : memref<1xf32, #tpu.memory_space<smem>>
    %cst = arith.constant 3.000000e-02 : f32
    %1 = arith.mulf %cst, %0 : f32
    %cst_0 = arith.constant 3.000000e-02 : f32
    %2 = arith.mulf %cst_0, %0 : f32
    %3 = arith.mulf %1, %2 : f32
    %c0_1 = arith.constant 0 : index
    %c0_2 = arith.constant 0 : index
    %4 = vector.load %arg4[%c0_1, %c0_2] : memref<128x48xf32, #tpu.memory_space<vmem>>, vector<128x48xf32>
    %c0_3 = arith.constant 0 : index
    %c0_4 = arith.constant 0 : index
    %c0_5 = arith.constant 0 : index
    %5 = vector.load %arg2[%c0_3, %c0_4, %c0_5] : memref<1x16x128xf32, #tpu.memory_space<vmem>>, vector<1x16x128xf32>
    %c0_6 = arith.constant 0 : index
    %c0_7 = arith.constant 0 : index
    %c0_8 = arith.constant 0 : index
    %6 = vector.load %arg3[%c0_6, %c0_7, %c0_8] : memref<1x16x128xf32, #tpu.memory_space<vmem>>, vector<1x16x128xf32>
    %cst_9 = arith.constant 0.000000e+00 : f32
    %7 = vector.broadcast %cst_9 : f32 to vector<1x6x128xf32>
    %cst_10 = arith.constant 0.000000e+00 : f32
    %8 = vector.broadcast %cst_10 : f32 to vector<1x6x128xf32>
    %cst_11 = arith.constant 0.000000e+00 : f32
    %9 = vector.broadcast %cst_11 : f32 to vector<1x6x128xf32>
    %cst_12 = arith.constant 0.000000e+00 : f32
    %10 = vector.broadcast %cst_12 : f32 to vector<1x6x128xf32>
    %cst_13 = arith.constant 0.000000e+00 : f32
    %11 = vector.broadcast %cst_13 : f32 to vector<1x6x128xf32>
    %12 = vector.extract_strided_slice %5 {offsets = [0, 0, 0], sizes = [1, 6, 128], strides = [1, 1, 1]} : vector<1x16x128xf32> to vector<1x6x128xf32>
    %13 = vector.extract_strided_slice %6 {offsets = [0, 0, 0], sizes = [1, 6, 128], strides = [1, 1, 1]} : vector<1x16x128xf32> to vector<1x6x128xf32>
    %cst_14 = arith.constant 0.00102838012 : f32
    %14 = vector.broadcast %cst_14 : f32 to vector<1x6x128xf32>
    %15 = arith.mulf %14, %12 : vector<1x6x128xf32>
    %cst_15 = arith.constant 0.00102838012 : f32
    %16 = vector.broadcast %cst_15 : f32 to vector<1x6x128xf32>
    %17 = arith.mulf %16, %13 : vector<1x6x128xf32>
    %18 = arith.addf %7, %15 : vector<1x6x128xf32>
    %19 = arith.addf %8, %17 : vector<1x6x128xf32>
    %20 = arith.mulf %15, %12 : vector<1x6x128xf32>
    %21 = arith.addf %9, %20 : vector<1x6x128xf32>
    %22 = arith.mulf %17, %13 : vector<1x6x128xf32>
    %23 = arith.addf %10, %22 : vector<1x6x128xf32>
    %24 = arith.mulf %15, %13 : vector<1x6x128xf32>
    %25 = arith.addf %11, %24 : vector<1x6x128xf32>
    %26 = vector.extract_strided_slice %5 {offsets = [0, 1, 0], sizes = [1, 6, 128], strides = [1, 1, 1]} : vector<1x16x128xf32> to vector<1x6x128xf32>
    %27 = vector.extract_strided_slice %6 {offsets = [0, 1, 0], sizes = [1, 6, 128], strides = [1, 1, 1]} : vector<1x16x128xf32> to vector<1x6x128xf32>
    %cst_16 = arith.constant 0.00759875821 : f32
    %28 = vector.broadcast %cst_16 : f32 to vector<1x6x128xf32>
    %29 = arith.mulf %28, %26 : vector<1x6x128xf32>
    %cst_17 = arith.constant 0.00759875821 : f32
    %30 = vector.broadcast %cst_17 : f32 to vector<1x6x128xf32>
    %31 = arith.mulf %30, %27 : vector<1x6x128xf32>
    %32 = arith.addf %18, %29 : vector<1x6x128xf32>
    %33 = arith.addf %19, %31 : vector<1x6x128xf32>
    %34 = arith.mulf %29, %26 : vector<1x6x128xf32>
    %35 = arith.addf %21, %34 : vector<1x6x128xf32>
    %36 = arith.mulf %31, %27 : vector<1x6x128xf32>
    %37 = arith.addf %23, %36 : vector<1x6x128xf32>
    %38 = arith.mulf %29, %27 : vector<1x6x128xf32>
    %39 = arith.addf %25, %38 : vector<1x6x128xf32>
    %40 = vector.extract_strided_slice %5 {offsets = [0, 2, 0], sizes = [1, 6, 128], strides = [1, 1, 1]} : vector<1x16x128xf32> to vector<1x6x128xf32>
    %41 = vector.extract_strided_slice %6 {offsets = [0, 2, 0], sizes = [1, 6, 128], strides = [1, 1, 1]} : vector<1x16x128xf32> to vector<1x6x128xf32>
    %cst_18 = arith.constant 0.0360007733 : f32
    %42 = vector.broadcast %cst_18 : f32 to vector<1x6x128xf32>
    %43 = arith.mulf %42, %40 : vector<1x6x128xf32>
    %cst_19 = arith.constant 0.0360007733 : f32
    %44 = vector.broadcast %cst_19 : f32 to vector<1x6x128xf32>
    %45 = arith.mulf %44, %41 : vector<1x6x128xf32>
    %46 = arith.addf %32, %43 : vector<1x6x128xf32>
    %47 = arith.addf %33, %45 : vector<1x6x128xf32>
    %48 = arith.mulf %43, %40 : vector<1x6x128xf32>
    %49 = arith.addf %35, %48 : vector<1x6x128xf32>
    %50 = arith.mulf %45, %41 : vector<1x6x128xf32>
    %51 = arith.addf %37, %50 : vector<1x6x128xf32>
    %52 = arith.mulf %43, %41 : vector<1x6x128xf32>
    %53 = arith.addf %39, %52 : vector<1x6x128xf32>
    %54 = vector.extract_strided_slice %5 {offsets = [0, 3, 0], sizes = [1, 6, 128], strides = [1, 1, 1]} : vector<1x16x128xf32> to vector<1x6x128xf32>
    %55 = vector.extract_strided_slice %6 {offsets = [0, 3, 0], sizes = [1, 6, 128], strides = [1, 1, 1]} : vector<1x16x128xf32> to vector<1x6x128xf32>
    %cst_20 = arith.constant 0.109360687 : f32
    %56 = vector.broadcast %cst_20 : f32 to vector<1x6x128xf32>
    %57 = arith.mulf %56, %54 : vector<1x6x128xf32>
    %cst_21 = arith.constant 0.109360687 : f32
    %58 = vector.broadcast %cst_21 : f32 to vector<1x6x128xf32>
    %59 = arith.mulf %58, %55 : vector<1x6x128xf32>
    %60 = arith.addf %46, %57 : vector<1x6x128xf32>
    %61 = arith.addf %47, %59 : vector<1x6x128xf32>
    %62 = arith.mulf %57, %54 : vector<1x6x128xf32>
    %63 = arith.addf %49, %62 : vector<1x6x128xf32>
    %64 = arith.mulf %59, %55 : vector<1x6x128xf32>
    %65 = arith.addf %51, %64 : vector<1x6x128xf32>
    %66 = arith.mulf %57, %55 : vector<1x6x128xf32>
    %67 = arith.addf %53, %66 : vector<1x6x128xf32>
    %68 = vector.extract_strided_slice %5 {offsets = [0, 4, 0], sizes = [1, 6, 128], strides = [1, 1, 1]} : vector<1x16x128xf32> to vector<1x6x128xf32>
    %69 = vector.extract_strided_slice %6 {offsets = [0, 4, 0], sizes = [1, 6, 128], strides = [1, 1, 1]} : vector<1x16x128xf32> to vector<1x6x128xf32>
    %cst_22 = arith.constant 0.213005543 : f32
    %70 = vector.broadcast %cst_22 : f32 to vector<1x6x128xf32>
    %71 = arith.mulf %70, %68 : vector<1x6x128xf32>
    %cst_23 = arith.constant 0.213005543 : f32
    %72 = vector.broadcast %cst_23 : f32 to vector<1x6x128xf32>
    %73 = arith.mulf %72, %69 : vector<1x6x128xf32>
    %74 = arith.addf %60, %71 : vector<1x6x128xf32>
    %75 = arith.addf %61, %73 : vector<1x6x128xf32>
    %76 = arith.mulf %71, %68 : vector<1x6x128xf32>
    %77 = arith.addf %63, %76 : vector<1x6x128xf32>
    %78 = arith.mulf %73, %69 : vector<1x6x128xf32>
    %79 = arith.addf %65, %78 : vector<1x6x128xf32>
    %80 = arith.mulf %71, %69 : vector<1x6x128xf32>
    %81 = arith.addf %67, %80 : vector<1x6x128xf32>
    %82 = vector.extract_strided_slice %5 {offsets = [0, 5, 0], sizes = [1, 6, 128], strides = [1, 1, 1]} : vector<1x16x128xf32> to vector<1x6x128xf32>
    %83 = vector.extract_strided_slice %6 {offsets = [0, 5, 0], sizes = [1, 6, 128], strides = [1, 1, 1]} : vector<1x16x128xf32> to vector<1x6x128xf32>
    %cst_24 = arith.constant 0.266011715 : f32
    %84 = vector.broadcast %cst_24 : f32 to vector<1x6x128xf32>
    %85 = arith.mulf %84, %82 : vector<1x6x128xf32>
    %cst_25 = arith.constant 0.266011715 : f32
    %86 = vector.broadcast %cst_25 : f32 to vector<1x6x128xf32>
    %87 = arith.mulf %86, %83 : vector<1x6x128xf32>
    %88 = arith.addf %74, %85 : vector<1x6x128xf32>
    %89 = arith.addf %75, %87 : vector<1x6x128xf32>
    %90 = arith.mulf %85, %82 : vector<1x6x128xf32>
    %91 = arith.addf %77, %90 : vector<1x6x128xf32>
    %92 = arith.mulf %87, %83 : vector<1x6x128xf32>
    %93 = arith.addf %79, %92 : vector<1x6x128xf32>
    %94 = arith.mulf %85, %83 : vector<1x6x128xf32>
    %95 = arith.addf %81, %94 : vector<1x6x128xf32>
    %96 = vector.extract_strided_slice %5 {offsets = [0, 6, 0], sizes = [1, 6, 128], strides = [1, 1, 1]} : vector<1x16x128xf32> to vector<1x6x128xf32>
    %97 = vector.extract_strided_slice %6 {offsets = [0, 6, 0], sizes = [1, 6, 128], strides = [1, 1, 1]} : vector<1x16x128xf32> to vector<1x6x128xf32>
    %cst_26 = arith.constant 0.213005543 : f32
    %98 = vector.broadcast %cst_26 : f32 to vector<1x6x128xf32>
    %99 = arith.mulf %98, %96 : vector<1x6x128xf32>
    %cst_27 = arith.constant 0.213005543 : f32
    %100 = vector.broadcast %cst_27 : f32 to vector<1x6x128xf32>
    %101 = arith.mulf %100, %97 : vector<1x6x128xf32>
    %102 = arith.addf %88, %99 : vector<1x6x128xf32>
    %103 = arith.addf %89, %101 : vector<1x6x128xf32>
    %104 = arith.mulf %99, %96 : vector<1x6x128xf32>
    %105 = arith.addf %91, %104 : vector<1x6x128xf32>
    %106 = arith.mulf %101, %97 : vector<1x6x128xf32>
    %107 = arith.addf %93, %106 : vector<1x6x128xf32>
    %108 = arith.mulf %99, %97 : vector<1x6x128xf32>
    %109 = arith.addf %95, %108 : vector<1x6x128xf32>
    %110 = vector.extract_strided_slice %5 {offsets = [0, 7, 0], sizes = [1, 6, 128], strides = [1, 1, 1]} : vector<1x16x128xf32> to vector<1x6x128xf32>
    %111 = vector.extract_strided_slice %6 {offsets = [0, 7, 0], sizes = [1, 6, 128], strides = [1, 1, 1]} : vector<1x16x128xf32> to vector<1x6x128xf32>
    %cst_28 = arith.constant 0.109360687 : f32
    %112 = vector.broadcast %cst_28 : f32 to vector<1x6x128xf32>
    %113 = arith.mulf %112, %110 : vector<1x6x128xf32>
    %cst_29 = arith.constant 0.109360687 : f32
    %114 = vector.broadcast %cst_29 : f32 to vector<1x6x128xf32>
    %115 = arith.mulf %114, %111 : vector<1x6x128xf32>
    %116 = arith.addf %102, %113 : vector<1x6x128xf32>
    %117 = arith.addf %103, %115 : vector<1x6x128xf32>
    %118 = arith.mulf %113, %110 : vector<1x6x128xf32>
    %119 = arith.addf %105, %118 : vector<1x6x128xf32>
    %120 = arith.mulf %115, %111 : vector<1x6x128xf32>
    %121 = arith.addf %107, %120 : vector<1x6x128xf32>
    %122 = arith.mulf %113, %111 : vector<1x6x128xf32>
    %123 = arith.addf %109, %122 : vector<1x6x128xf32>
    %124 = vector.extract_strided_slice %5 {offsets = [0, 8, 0], sizes = [1, 6, 128], strides = [1, 1, 1]} : vector<1x16x128xf32> to vector<1x6x128xf32>
    %125 = vector.extract_strided_slice %6 {offsets = [0, 8, 0], sizes = [1, 6, 128], strides = [1, 1, 1]} : vector<1x16x128xf32> to vector<1x6x128xf32>
    %cst_30 = arith.constant 0.0360007733 : f32
    %126 = vector.broadcast %cst_30 : f32 to vector<1x6x128xf32>
    %127 = arith.mulf %126, %124 : vector<1x6x128xf32>
    %cst_31 = arith.constant 0.0360007733 : f32
    %128 = vector.broadcast %cst_31 : f32 to vector<1x6x128xf32>
    %129 = arith.mulf %128, %125 : vector<1x6x128xf32>
    %130 = arith.addf %116, %127 : vector<1x6x128xf32>
    %131 = arith.addf %117, %129 : vector<1x6x128xf32>
    %132 = arith.mulf %127, %124 : vector<1x6x128xf32>
    %133 = arith.addf %119, %132 : vector<1x6x128xf32>
    %134 = arith.mulf %129, %125 : vector<1x6x128xf32>
    %135 = arith.addf %121, %134 : vector<1x6x128xf32>
    %136 = arith.mulf %127, %125 : vector<1x6x128xf32>
    %137 = arith.addf %123, %136 : vector<1x6x128xf32>
    %138 = vector.extract_strided_slice %5 {offsets = [0, 9, 0], sizes = [1, 6, 128], strides = [1, 1, 1]} : vector<1x16x128xf32> to vector<1x6x128xf32>
    %139 = vector.extract_strided_slice %6 {offsets = [0, 9, 0], sizes = [1, 6, 128], strides = [1, 1, 1]} : vector<1x16x128xf32> to vector<1x6x128xf32>
    %cst_32 = arith.constant 0.00759875821 : f32
    %140 = vector.broadcast %cst_32 : f32 to vector<1x6x128xf32>
    %141 = arith.mulf %140, %138 : vector<1x6x128xf32>
    %cst_33 = arith.constant 0.00759875821 : f32
    %142 = vector.broadcast %cst_33 : f32 to vector<1x6x128xf32>
    %143 = arith.mulf %142, %139 : vector<1x6x128xf32>
    %144 = arith.addf %130, %141 : vector<1x6x128xf32>
    %145 = arith.addf %131, %143 : vector<1x6x128xf32>
    %146 = arith.mulf %141, %138 : vector<1x6x128xf32>
    %147 = arith.addf %133, %146 : vector<1x6x128xf32>
    %148 = arith.mulf %143, %139 : vector<1x6x128xf32>
    %149 = arith.addf %135, %148 : vector<1x6x128xf32>
    %150 = arith.mulf %141, %139 : vector<1x6x128xf32>
    %151 = arith.addf %137, %150 : vector<1x6x128xf32>
    %152 = vector.extract_strided_slice %5 {offsets = [0, 10, 0], sizes = [1, 6, 128], strides = [1, 1, 1]} : vector<1x16x128xf32> to vector<1x6x128xf32>
    %153 = vector.extract_strided_slice %6 {offsets = [0, 10, 0], sizes = [1, 6, 128], strides = [1, 1, 1]} : vector<1x16x128xf32> to vector<1x6x128xf32>
    %cst_34 = arith.constant 0.00102838012 : f32
    %154 = vector.broadcast %cst_34 : f32 to vector<1x6x128xf32>
    %155 = arith.mulf %154, %152 : vector<1x6x128xf32>
    %cst_35 = arith.constant 0.00102838012 : f32
    %156 = vector.broadcast %cst_35 : f32 to vector<1x6x128xf32>
    %157 = arith.mulf %156, %153 : vector<1x6x128xf32>
    %158 = arith.addf %144, %155 : vector<1x6x128xf32>
    %159 = arith.addf %145, %157 : vector<1x6x128xf32>
    %160 = arith.mulf %155, %152 : vector<1x6x128xf32>
    %161 = arith.addf %147, %160 : vector<1x6x128xf32>
    %162 = arith.mulf %157, %153 : vector<1x6x128xf32>
    %163 = arith.addf %149, %162 : vector<1x6x128xf32>
    %164 = arith.mulf %155, %153 : vector<1x6x128xf32>
    %165 = arith.addf %151, %164 : vector<1x6x128xf32>
    %166 = vector.shape_cast %158 : vector<1x6x128xf32> to vector<6x128xf32>
    %cst_36 = arith.constant dense<0.000000e+00> : vector<6x48xf32>
    %167 = tpu.matmul %166, %4, %cst_36 {dimension_numbers = #tpu.dot_dimension_numbers<[1], [0], [0], [1], [0, 0, 1, 1], [], []>, precision = #tpu.contract_precision<fp32>} : vector<6x128xf32>, vector<128x48xf32>, vector<6x48xf32> -> vector<6x48xf32>
    %168 = vector.shape_cast %167 : vector<6x48xf32> to vector<1x6x48xf32>
    %169 = vector.shape_cast %159 : vector<1x6x128xf32> to vector<6x128xf32>
    %cst_37 = arith.constant dense<0.000000e+00> : vector<6x48xf32>
    %170 = tpu.matmul %169, %4, %cst_37 {dimension_numbers = #tpu.dot_dimension_numbers<[1], [0], [0], [1], [0, 0, 1, 1], [], []>, precision = #tpu.contract_precision<fp32>} : vector<6x128xf32>, vector<128x48xf32>, vector<6x48xf32> -> vector<6x48xf32>
    %171 = vector.shape_cast %170 : vector<6x48xf32> to vector<1x6x48xf32>
    %172 = vector.shape_cast %161 : vector<1x6x128xf32> to vector<6x128xf32>
    %cst_38 = arith.constant dense<0.000000e+00> : vector<6x48xf32>
    %173 = tpu.matmul %172, %4, %cst_38 {dimension_numbers = #tpu.dot_dimension_numbers<[1], [0], [0], [1], [0, 0, 1, 1], [], []>, precision = #tpu.contract_precision<fp32>} : vector<6x128xf32>, vector<128x48xf32>, vector<6x48xf32> -> vector<6x48xf32>
    %174 = vector.shape_cast %173 : vector<6x48xf32> to vector<1x6x48xf32>
    %175 = vector.shape_cast %163 : vector<1x6x128xf32> to vector<6x128xf32>
    %cst_39 = arith.constant dense<0.000000e+00> : vector<6x48xf32>
    %176 = tpu.matmul %175, %4, %cst_39 {dimension_numbers = #tpu.dot_dimension_numbers<[1], [0], [0], [1], [0, 0, 1, 1], [], []>, precision = #tpu.contract_precision<fp32>} : vector<6x128xf32>, vector<128x48xf32>, vector<6x48xf32> -> vector<6x48xf32>
    %177 = vector.shape_cast %176 : vector<6x48xf32> to vector<1x6x48xf32>
    %178 = vector.shape_cast %165 : vector<1x6x128xf32> to vector<6x128xf32>
    %cst_40 = arith.constant dense<0.000000e+00> : vector<6x48xf32>
    %179 = tpu.matmul %178, %4, %cst_40 {dimension_numbers = #tpu.dot_dimension_numbers<[1], [0], [0], [1], [0, 0, 1, 1], [], []>, precision = #tpu.contract_precision<fp32>} : vector<6x128xf32>, vector<128x48xf32>, vector<6x48xf32> -> vector<6x48xf32>
    %180 = vector.shape_cast %179 : vector<6x48xf32> to vector<1x6x48xf32>
    %181 = arith.mulf %168, %168 : vector<1x6x48xf32>
    %182 = arith.subf %174, %181 : vector<1x6x48xf32>
    %183 = arith.mulf %171, %171 : vector<1x6x48xf32>
    %184 = arith.subf %177, %183 : vector<1x6x48xf32>
    %185 = arith.mulf %168, %171 : vector<1x6x48xf32>
    %186 = arith.subf %180, %185 : vector<1x6x48xf32>
    %cst_41 = arith.constant 2.000000e+00 : f32
    %187 = vector.broadcast %cst_41 : f32 to vector<1x6x48xf32>
    %188 = arith.mulf %187, %186 : vector<1x6x48xf32>
    %189 = vector.broadcast %3 : f32 to vector<1x6x48xf32>
    %190 = arith.addf %188, %189 : vector<1x6x48xf32>
    %191 = arith.addf %182, %184 : vector<1x6x48xf32>
    %192 = vector.broadcast %3 : f32 to vector<1x6x48xf32>
    %193 = arith.addf %191, %192 : vector<1x6x48xf32>
    %194 = tpu.reciprocal %193 {approx = true} : vector<1x6x48xf32> -> vector<1x6x48xf32>
    %195 = arith.mulf %193, %194 : vector<1x6x48xf32>
    %cst_42 = arith.constant 2.000000e+00 : f32
    %196 = vector.broadcast %cst_42 : f32 to vector<1x6x48xf32>
    %197 = arith.subf %196, %195 : vector<1x6x48xf32>
    %198 = arith.mulf %194, %197 : vector<1x6x48xf32>
    %199 = arith.mulf %190, %198 : vector<1x6x48xf32>
    %200 = vector.shape_cast %199 : vector<1x6x48xf32> to vector<1x1x6x48xf32>
    %cst_43 = arith.constant dense<0.000000e+00> : vector<1xf32>
    %201 = vector.multi_reduction <add>, %200, %cst_43 [1, 2, 3] : vector<1x1x6x48xf32> to vector<1xf32>
    %202 = vector.shape_cast %201 : vector<1xf32> to vector<1x1x1x1xf32>
    %203 = vector.extract %202[0, 0, 0, 0] : f32 from vector<1x1x1x1xf32>
    %cst_44 = arith.constant 0.000000e+00 : f32
    %204 = arith.addf %cst_44, %203 : f32
    %c0_45 = arith.constant 0 : index
    %c0_46 = arith.constant 0 : index
    %205 = memref.load %arg5[%c0_45, %c0_46] : memref<1x1xf32, #tpu.memory_space<smem>>
    memref.store %204, %arg5[%c0_45, %c0_46] : memref<1x1xf32, #tpu.memory_space<smem>>
    return
  }
  func.func @transform_0(%arg0: i32, %arg1: memref<1xf32, #tpu.memory_space<smem>>) -> (i32, i32, i32) {
    %c0_i32 = arith.constant 0 : i32
    %c0_i32_0 = arith.constant 0 : i32
    %c0_i32_1 = arith.constant 0 : i32
    return %arg0, %c0_i32, %c0_i32_0 : i32, i32, i32
  }
  func.func @transform_1(%arg0: i32, %arg1: memref<1xf32, #tpu.memory_space<smem>>) -> (i32, i32, i32) {
    %c0_i32 = arith.constant 0 : i32
    %c0_i32_0 = arith.constant 0 : i32
    %c0_i32_1 = arith.constant 0 : i32
    return %arg0, %c0_i32, %c0_i32_0 : i32, i32, i32
  }
  func.func @transform_2(%arg0: i32, %arg1: memref<1xf32, #tpu.memory_space<smem>>) -> (i32, i32) {
    %c0_i32 = arith.constant 0 : i32
    %c0_i32_0 = arith.constant 0 : i32
    %c0_i32_1 = arith.constant 0 : i32
    return %c0_i32, %c0_i32_0 : i32, i32
  }
  func.func @transform_3(%arg0: i32, %arg1: memref<1xf32, #tpu.memory_space<smem>>) -> (i32, i32) {
    %c0_i32 = arith.constant 0 : i32
    %c0_i32_0 = arith.constant 0 : i32
    return %arg0, %c0_i32 : i32, i32
  }
}

</mosaic_0001>

<bundles_post_ra>
// kernel: tpu_custom_call.1
= control target key start
LH: loop header
LB: loop body
LE: loop exit
PB: predicated region body
PF: predicated region fallthrough
CT: control target
= control target key end

     0   :  { %v6837_v3 = vmov 0.0   ;;  %vm5179_vm0 = vmmov 0   ;;  %s6828_s0 = inlined_call_operand.<no memory space> [shape: f32[1], index: 0, kind: input, shape index: {}]   ;;  %s6829_s1 = inlined_call_operand.vmem [shape: f32[1,16,128], index: 1, kind: input, shape index: {}]   ;;  %s6830_s2 = inlined_call_operand.vmem [shape: f32[1,16,128], index: 2, kind: input, shape index: {}]   ;;  %s6831_s3 = inlined_call_operand.vmem [shape: f32[128,48], index: 3, kind: input, shape index: {}]   ;;  %s6832_s4 = inlined_call_operand.hbm [shape: f32[1,1], index: 4, kind: output, shape index: {}]  }
   0x1   :  { %v35_v0 = vld [vmem:[%s6831_s3 + $0x78] sm:$0xff]  ;;  %v34_v1 = vld [vmem:[%s6831_s3 + $0x70] sm:$0xff]  ;;  %v33_v2 = vld [vmem:[%s6831_s3 + $0x68] sm:$0xff]  ;;  %4108 = vmatprep.subr.mxu0 %v6837_v3  ;;  %4143 = vmatprep.subr.mxu1 %v6837_v3 }
   0x2   :  { %v5216_v4 = vand.u32 4294901760, %v35_v0  ;;  %v5218_v5 = vand.u32 4294901760, %v34_v1  ;;  %v5220_v6 = vand.u32 4294901760, %v33_v2  ;;  %v32_v7 = vld [vmem:[%s6831_s3 + $0x60] sm:$0xff]  ;;  %v31_v8 = vld [vmem:[%s6831_s3 + $0x58] sm:$0xff]  ;;  %v30_v9 = vld [vmem:[%s6831_s3 + $0x50] sm:$0xff]  ;;  %4140 = vmatprep.mubr.msk.f32.mxu0 %vm5179_vm0, %v6837_v3  ;;  %4175 = vmatprep.mubr.msk.f32.mxu1 %vm5179_vm0, %v6837_v3 }
   0x3   :  { %v5232_v10 = vand.u32 4294901760, %v32_v7  ;;  %v5234_v11 = vand.u32 4294901760, %v31_v8  ;;  %v5236_v12 = vand.u32 4294901760, %v30_v9  ;;  %v29_v13 = vld [vmem:[%s6831_s3 + $0x48] sm:$0xff]  ;;  %v28_v14 = vld [vmem:[%s6831_s3 + $0x40] sm:$0xff]  ;;  %v27_v19 = vld [vmem:[%s6831_s3 + $0x38] sm:$0xff] }
   0x4   :  { %4109 = vmatpush3.msra.mxu0 %v5216_v4  ;;  %v5250_v15 = vsub.f32 %v35_v0, %v5216_v4  ;;  %v5253_v16 = vsub.f32 %v34_v1, %v5218_v5  ;;  %v5255_v17 = vand.u32 4294901760, %v29_v13  ;;  %v5258_v18 = vsub.f32 %v33_v2, %v5220_v6  ;;  %v26_v26 = vld [vmem:[%s6831_s3 + $0x30] sm:$0xff]  ;;  %v25_v31 = vld [vmem:[%s6831_s3 + $0x28] sm:$0xff]  ;;  %v24_v36 = vld [vmem:[%s6831_s3 + $0x20] sm:$0xff] }
   0x5   :  { %4110 = vmatprep.subr.mxu0 %v6837_v3  ;;  %v5265_v20 = vsub.f32 %v32_v7, %v5232_v10  ;;  %v5268_v21 = vsub.f32 %v31_v8, %v5234_v11  ;;  %v5280_v25 = vand.u32 4294901760, %v28_v14  ;;  %v5289_v28 = vand.u32 4294901760, %v27_v19 }
   0x6   :  { %6944 = vst [vmem:[#allocation7_spill] sm:$0xff] %v5253_v16  ;;  %6945 = vst [vmem:[#allocation8_spill] sm:$0xff] %v5258_v18  ;;  %4111 = vmatpush3.msra.mxu0 %v5218_v5  ;;  %v5272_v22 = vand.u32 4294901760, %v5250_v15  ;;  %v5275_v23 = vand.u32 4294901760, %v5253_v16  ;;  %v5278_v24 = vand.u32 4294901760, %v5258_v18  ;;  %v5295_v30 = vsub.f32 %v30_v9, %v5236_v12 }
   0x7   :  { %6946 = vst [vmem:[#allocation9_spill] sm:$0xff] %v5265_v20  ;;  %6947 = vst [vmem:[#allocation10_spill] sm:$0xff] %v5268_v21  ;;  %4112 = vmatprep.subr.mxu0 %v6837_v3  ;;  %v5287_v27 = vand.u32 4294901760, %v5265_v20  ;;  %v5292_v29 = vand.u32 4294901760, %v5268_v21  ;;  %v5308_v35 = vsub.f32 %v29_v13, %v5255_v17 }
   0x8   :  { %6948 = vst [vmem:[#allocation11_spill] sm:$0xff] %v5272_v22  ;;  %6949 = vst [vmem:[#allocation12_spill] sm:$0xff] %v5275_v23  ;;  %4113 = vmatpush3.msra.mxu0 %v5220_v6  ;;  %v445_v32 = vsub.f32 %v5250_v15, %v5272_v22  ;;  %v452_v33 = vsub.f32 %v5253_v16, %v5275_v23  ;;  %v459_v34 = vsub.f32 %v5258_v18, %v5278_v24 }
   0x9   :  { %6950 = vst [vmem:[#allocation13_spill] sm:$0xff] %v5278_v24  ;;  %6951 = vst [vmem:[#allocation14_spill] sm:$0xff] %v5287_v27 }
   0xa   :  { %6952 = vst [vmem:[#allocation15_spill] sm:$0xff] %v5292_v29  ;;  %6953 = vst [vmem:[#allocation16_spill] sm:$0xff] %v5295_v30 }
   0xb   :  { %6954 = vst [vmem:[#allocation17_spill] sm:$0xff] %v5308_v35 }
   0xc   :  { %10 = vsyncpa [#allocation5], 0  ;;  %4114 = vmatprep.subr.mxu0 %v6837_v3  ;;  %v466_v37 = vsub.f32 %v5265_v20, %v5287_v27  ;;  %v473_v38 = vsub.f32 %v5268_v21, %v5292_v29  ;;  %v5318_v39 = vand.u32 4294901760, %v26_v26  ;;  %v5321_v40 = vand.u32 4294901760, %v5295_v30  ;;  %v5342_v47 = vld [vmem:[%s6831_s3 + $0x18] sm:$0xff]  ;;  %v5347_v48 = vld [vmem:[%s6831_s3 + $0x10] sm:$0xff] }
   0xd   :  { %4115 = vmatpush3.msra.mxu0 %v5232_v10  ;;  %v5324_v41 = vand.u32 4294901760, %v445_v32  ;;  %v5326_v42 = vand.u32 4294901760, %v452_v33  ;;  %v5328_v43 = vand.u32 4294901760, %v25_v31  ;;  %v5331_v44 = vand.u32 4294901760, %v5308_v35  ;;  %v5375_v57 = vld [vmem:[%s6829_s1] sm:$0xff]  ;;  %v5391_v61 = vld [vmem:[%s6831_s3 + $0x8] sm:$0xff] }
   0xe   :  { %4116 = vmatprep.subr.mxu0 %v6837_v3  ;;  %v5334_v45 = vand.u32 4294901760, %v24_v36  ;;  %v5337_v46 = vsub.f32 %v28_v14, %v5280_v25  ;;  %v5351_v49 = vand.u32 4294901760, %v459_v34  ;;  %v5353_v50 = vand.u32 4294901760, %v466_v37  ;;  %6964 = vst [vmem:[#allocation27_spill] sm:$0xff] %v5375_v57  ;;  %v5419_v9 = vld [vmem:[%s6829_s1 + $0x8] sm:$0xff]  ;;  %s5180_s10 = smov [#allocation4]  }
   0xf   :  { %6955 = vst [vmem:[#allocation18_spill] sm:$0xff] %v5324_v41  ;;  %6956 = vst [vmem:[#allocation19_spill] sm:$0xff] %v5326_v42  ;;  %4117 = vmatpush3.msra.mxu0 %v5234_v11  ;;  %4144 = vmatpush3.msra.mxu1 %v5324_v41  ;;  %v5355_v51 = vand.u32 4294901760, %v473_v38  ;;  %v5358_v52 = vsub.f32 %v27_v19, %v5289_v28  ;;  %vm106_vm1 = vcmask 1044480   ;;  %v480_v53 = vsub.f32 %v5295_v30, %v5321_v40  ;;  %s18_s8 = smul.f32 0.03, %s6828_s0 }
  0x10   :  { %6957 = vst [vmem:[#allocation20_spill] sm:$0xff] %v5337_v46  ;;  %6958 = vst [vmem:[#allocation21_spill] sm:$0xff] %v5351_v49  ;;  %4118 = vmatprep.subr.mxu0 %v6837_v3  ;;  %4145 = vmatprep.subr.mxu1 %v6837_v3  ;;  %v487_v54 = vsub.f32 %v5308_v35, %v5331_v44  ;;  %v5367_v55 = vand.u32 4294901760, %v5337_v46  ;;  %v5370_v56 = vsub.f32 %v26_v26, %v5318_v39  ;;  %vm152_vm2 = vcmask 1043456  }
  0x11   :  { %6959 = vst [vmem:[#allocation22_spill] sm:$0xff] %v5353_v50  ;;  %6960 = vst [vmem:[#allocation23_spill] sm:$0xff] %v5355_v51  ;;  %4119 = vmatpush3.msra.mxu0 %v5236_v12  ;;  %4146 = vmatpush3.msra.mxu1 %v5326_v42  ;;  %v5380_v58 = vand.u32 4294901760, %v5342_v47  ;;  %v5383_v59 = vand.u32 4294901760, %v5358_v52  ;;  %v5386_v60 = vand.u32 4294901760, %v5347_v48  ;;  %v5394_v62 = vsub.f32 %v25_v31, %v5328_v43  ;;  %s19_s9 = smul.f32 %s18_s8, %s18_s8 }
  0x12   :  { %6961 = vst [vmem:[#allocation24_spill] sm:$0xff] %v5358_v52  ;;  %6962 = vst [vmem:[#allocation25_spill] sm:$0xff] %v5367_v55  ;;  %4120 = vmatprep.subr.mxu0 %v6837_v3  ;;  %4147 = vmatprep.subr.mxu1 %v6837_v3  ;;  %v494_v63 = vsub.f32 %v5337_v46, %v5367_v55  ;;  %v5401_v0 = vand.u32 4294901760, %v5370_v56  ;;  %v5404_v1 = vsub.f32 %v24_v36, %v5334_v45  ;;  %vm198_vm3 = vcmask 1042432  }
  0x13   :  { %6963 = vst [vmem:[#allocation26_spill] sm:$0xff] %v5370_v56  ;;  %6965 = vst [vmem:[#allocation28_spill] sm:$0xff] %v5383_v59  ;;  %v5407_v2 = vmul.f32 0.0010283801, %v5375_v57  ;;  %4121 = vmatpush3.msra.mxu0 %v5255_v17  ;;  %4148 = vmatpush3.msra.mxu1 %v5351_v49  ;;  %v501_v7 = vsub.f32 %v5358_v52, %v5383_v59  ;;  %v5414_v8 = vand.u32 4294901760, %v5394_v62  ;;  %v5429_v19 = vand.u32 4294901760, %v480_v53 }
  0x14   :  { %6966 = vst [vmem:[#allocation29_spill] sm:$0xff] %v5394_v62  ;;  %6967 = vst [vmem:[#allocation30_spill] sm:$0xff] %v5401_v0  ;;  %v5422_v13 = vmul.f32 0.007598758, %v5375_v57  ;;  %v5425_v14 = vmul.f32 0.036000773, %v5375_v57  ;;  %4122 = vmatprep.subr.mxu0 %v6837_v3  ;;  %4149 = vmatprep.subr.mxu1 %v6837_v3  ;;  %v508_v53 = vsub.f32 %v5370_v56, %v5401_v0 }
  0x15   :  { %6968 = vst [vmem:[#allocation31_spill] sm:$0xff] %v5404_v1  ;;  %6969 = vst [vmem:[#allocation32_spill] sm:$0xff] %v5407_v2  ;;  %v5432_v26 = vand.u32 4294901760, %v5391_v61  ;;  %v5435_v31 = vand.u32 4294901760, %v5404_v1  ;;  %v5438_v32 = vmul.f32 0.10936069, %v5375_v57  ;;  %4123 = vmatpush3.msra.mxu0 %v5280_v25  ;;  %4150 = vmatpush3.msra.mxu1 %v5353_v50 }
  0x16   :  { %6970 = vst [vmem:[#allocation33_spill] sm:$0xff] %v5414_v8  ;;  %6971 = vst [vmem:[#allocation34_spill] sm:$0xff] %v5419_v9  ;;  %v5442_v33 = vand.u32 4294901760, %v487_v54  ;;  %v5444_v34 = vand.u32 4294901760, %v494_v63  ;;  %v53_v36 = vrot.slane %v5422_v13, 1  ;;  %v78_v37 = vrot.slane %v5425_v14, 2  ;;  %4124 = vmatprep.subr.mxu0 %v6837_v3  ;;  %4151 = vmatprep.subr.mxu1 %v6837_v3 }
  0x17   :  { %6972 = vst [vmem:[#allocation35_spill] sm:$0xff] %v5422_v13  ;;  %6973 = vst [vmem:[#allocation36_spill] sm:$0xff] %v5425_v14  ;;  %v5450_v38 = vand.u32 4294901760, %v501_v7  ;;  %v5455_v49 = vmul.f32 0.10936069, %v5419_v9  ;;  %v107_v54 = vrot.slane %v5438_v32, 3  ;;  %4125 = vmatpush3.msra.mxu0 %v5289_v28  ;;  %4152 = vmatpush3.msra.mxu1 %v5355_v51  ;;  %v515_v63 = vsub.f32 %v5394_v62, %v5414_v8 }
  0x18   :  { %6974 = vst [vmem:[#allocation37_spill] sm:$0xff] %v5429_v19  ;;  %6975 = vst [vmem:[#allocation38_spill] sm:$0xff] %v5435_v31  ;;  %v55_v14 = vadd.f32 %v53_v36, %v5407_v2  ;;  %v5464_v7 = vmul.f32 0.21300554, %v5375_v57  ;;  %v5467_v3 = vmul.f32 0.21300554, %v5419_v9  ;;  %v522_v50 = vsub.f32 %v5404_v1, %v5435_v31 }
  0x19   :  { %6976 = vst [vmem:[#allocation39_spill] sm:$0xff] %v5438_v32  ;;  %6977 = vst [vmem:[#allocation40_spill] sm:$0xff] %v5455_v49  ;;  %v6980_v13 = vmov 0.0   ;;  %v108_v51 = vrot.slane %v5455_v49, 3  ;;  %v5475_v42 = vmul.f32 0.26601171, %v5375_v57 }
  0x1a   :  { %6978 = vst [vmem:[#allocation41_spill] sm:$0xff] %v5464_v7  ;;  %6979 = vst [vmem:[#allocation42_spill] sm:$0xff] %v5467_v3  ;;  %4126 = vmatprep.subr.mxu0 %v6980_v13  ;;  %4153 = vmatprep.subr.mxu1 %v6980_v13  ;;  %v20_v36 = vld [vmem:[%s6831_s3] sm:$0xff]  ;;  %v80_v2 = vadd.f32 %v78_v37, %v55_v14  ;;  %v153_v41 = vrot.slane %v5464_v7, 4  ;;  %v154_v8 = vrot.slane %v5467_v3, 4  ;;  %vm238_vm4 = vcmask 1041408  }
  0x1b   :  { %6981 = vst [vmem:[#allocation43_spill] sm:$0xff] %v5475_v42  ;;  %4127 = vmatpush3.msra.mxu0 %v5318_v39  ;;  %4154 = vmatpush3.msra.mxu1 %v5429_v19  ;;  %v5485_v31 = vmul.f32 0.26601171, %v5419_v9  ;;  %v109_v57 = vsel %vm106_vm1, %v107_v54, %v108_v51  ;;  %v199_v19 = vrot.slane %v5475_v42, 5  ;;  %v239_v59 = vrot.slane %v5464_v7, 6 }
  0x1c   :  { %4128 = vmatprep.subr.mxu0 %v6980_v13  ;;  %4155 = vmatprep.subr.mxu1 %v6980_v13  ;;  %v111_v14 = vadd.f32 %v109_v57, %v80_v2  ;;  %v155_v37 = vsel %vm152_vm2, %v153_v41, %v154_v8  ;;  %v5498_v51 = vand.u32 4294901760, %v20_v36  ;;  %v240_v54 = vrot.slane %v5467_v3, 6 }
  0x1d   :  { %6982 = vst [vmem:[#allocation44_spill] sm:$0xff] %v5485_v31  ;;  %4129 = vmatpush3.msra.mxu0 %v5328_v43  ;;  %4156 = vmatpush3.msra.mxu1 %v5442_v33  ;;  %v200_v0 = vrot.slane %v5485_v31, 5  ;;  %v265_v42 = vrot.slane %v5438_v32, 7  ;;  %v266_v55 = vrot.slane %v5455_v49, 7  ;;  %v5505_v41 = vand.u32 4294901760, %v508_v53 }
  0x1e   :  { %4130 = vmatprep.subr.mxu0 %v6980_v13  ;;  %4157 = vmatprep.subr.mxu1 %v6980_v13  ;;  %v157_v57 = vadd.f32 %v155_v37, %v111_v14  ;;  %vm264_vm5 = vcmask 1040384   ;;  %v5510_v8 = vand.u32 4294901760, %v515_v63  ;;  %v5512_v31 = vand.u32 4294901760, %v522_v50 }
  0x1f   :  { %4131 = vmatpush3.msra.mxu0 %v5334_v45  ;;  %4158 = vmatpush3.msra.mxu1 %v5444_v34  ;;  %v201_v2 = vsel %vm198_vm3, %v199_v19, %v200_v0  ;;  %v241_v3 = vsel %vm238_vm4, %v239_v59, %v240_v54  ;;  %v5517_v7 = vsub.f32 %v5342_v47, %v5380_v58  ;;  %v5522_v19 = vmul.f32 0.007598758, %v5419_v9 }
  0x20   :  { %4132 = vmatprep.subr.mxu0 %v6980_v13  ;;  %4159 = vmatprep.subr.mxu1 %v6980_v13  ;;  %v203_v0 = vadd.f32 %v201_v2, %v157_v57  ;;  %v5526_v53 = vsub.f32 %v5347_v48, %v5386_v60  ;;  %v5530_v50 = vsub.f32 %v5391_v61, %v5432_v26  ;;  %v5536_v59 = vmul.f32 0.036000773, %v5419_v9 }
  0x21   :  { %6983 = vst [vmem:[#allocation45_spill] sm:$0xff] %v5517_v7  ;;  %4133 = vmatpush3.msra.mxu0 %v5380_v58  ;;  %4160 = vmatpush3.msra.mxu1 %v5450_v38  ;;  %6984 = vst [vmem:[#allocation46_spill] sm:$0xff] %v5522_v19  ;;  %v267_v47 = vsel %vm264_vm5, %v265_v42, %v266_v55  ;;  %v5539_v63 = vand.u32 4294901760, %v5517_v7  ;;  %v5542_v14 = vsub.f32 %v20_v36, %v5498_v51  ;;  %vm3571_vm6 = vcmask 390144  }
  0x22   :  { %6985 = vst [vmem:[#allocation47_spill] sm:$0xff] %v5526_v53  ;;  %6986 = vst [vmem:[#allocation48_spill] sm:$0xff] %v5530_v50  ;;  %4134 = vmatprep.subr.mxu0 %v6980_v13  ;;  %4161 = vmatprep.subr.mxu1 %v6980_v13  ;;  %v243_v48 = vadd.f32 %v241_v3, %v203_v0  ;;  %v5547_v61 = vmul.f32 0.0010283801, %v5419_v9  ;;  %v5550_v37 = vand.u32 4294901760, %v5526_v53  ;;  %v5553_v42 = vand.u32 4294901760, %v5530_v50 }
  0x23   :  { %6987 = vst [vmem:[#allocation49_spill] sm:$0xff] %v5536_v59  ;;  %6988 = vst [vmem:[#allocation50_spill] sm:$0xff] %v5542_v14  ;;  %4135 = vmatpush3.msra.mxu0 %v5386_v60  ;;  %4162 = vmatpush3.msra.mxu1 %v5505_v41  ;;  %v529_v55 = vsub.f32 %v5517_v7, %v5539_v63  ;;  %v5560_v36 = vand.u32 4294901760, %v5542_v14  ;;  %v303_v54 = vrot.slane %v5522_v19, 1 }
  0x24   :  { %6989 = vst [vmem:[#allocation51_spill] sm:$0xff] %v5547_v61  ;;  %4136 = vmatprep.subr.mxu0 %v6980_v13  ;;  %4163 = vmatprep.subr.mxu1 %v6980_v13  ;;  %v269_v3 = vadd.f32 %v267_v47, %v243_v48  ;;  %v536_v57 = vsub.f32 %v5526_v53, %v5550_v37  ;;  %v328_v48 = vrot.slane %v5547_v61, 2 }
  0x25   :  { %4137 = vmatpush3.msra.mxu0 %v5432_v26  ;;  %4164 = vmatpush3.msra.mxu1 %v5510_v8  ;;  %v543_v2 = vsub.f32 %v5530_v50, %v5553_v42  ;;  %v5571_v0 = vand.u32 4294901760, %v529_v55  ;;  %v550_v49 = vsub.f32 %v5542_v14, %v5560_v36 }
  0x26   :  { %4138 = vmatprep.subr.mxu0 %v6980_v13  ;;  %4165 = vmatprep.subr.mxu1 %v6980_v13  ;;  %v292_v47 = vadd.f32 %v5536_v59, %v269_v3  ;;  %v5577_v19 = vand.u32 4294901760, %v536_v57 }
  0x27   :  { %4139 = vmatpush3.msra.mxu0 %v5498_v51  ;;  %4166 = vmatpush3.msra.mxu1 %v5512_v31  ;;  %v5584_v55 = vand.u32 4294901760, %v543_v2  ;;  %v5588_v3 = vand.u32 4294901760, %v550_v49  ;;  %v38_v2 = vld [vmem:[%s6830_s2] sm:$0xff] }
  0x28   :  { %4167 = vmatprep.subr.mxu1 %v6980_v13  ;;  %4178 = vmatprep.subr.mxu0 %v6980_v13  ;;  %v305_v9 = vadd.f32 %v303_v54, %v292_v47  ;;  %v5675_v47 = vmul.f32 0.007598758, %v38_v2  ;;  %v5697_v61 = vmul.f32 0.10936069, %v38_v2 }
  0x29   :  { %4168 = vmatpush3.msra.mxu1 %v5571_v0  ;;  %6990 = vst [vmem:[#allocation52_spill] sm:$0xff] %v5584_v55  ;;  %6991 = vst [vmem:[#allocation53_spill] sm:$0xff] %v5588_v3 }
  0x2a   :  { %4169 = vmatprep.subr.mxu1 %v6980_v13  ;;  %v330_v32 = vadd.f32 %v328_v48, %v305_v9  ;;  %6992 = vst [vmem:[#allocation54_spill] sm:$0xff] %v5675_v47  ;;  %v5684_v48 = vld [vmem:[%s6830_s2 + $0x8] sm:$0xff]  ;;  %6995 = vst [vmem:[#allocation57_spill] sm:$0xff] %v5697_v61 }
  0x2b   :  { %4170 = vmatpush3.msra.mxu1 %v5577_v19  ;;  %v5700_v59 = vmul.f32 0.10936069, %v5684_v48 }
  0x2c   :  { %4171 = vmatprep.subr.mxu1 %v6980_v13  ;;  %v5591_v57 = vand.u32 4294901760, %v330_v32 }
  0x2d   :  { %4172 = vmatpush3.msra.mxu1 %v5584_v55  ;;  %6996 = vst [vmem:[#allocation58_spill] sm:$0xff] %v5700_v59 }
  0x2e   :  { %4173 = vmatprep.subr.mxu1 %v6980_v13  ;;  %v5596_v54 = vsub.f32 %v330_v32, %v5591_v57 }
  0x2f   :  { %4174 = vmatpush3.msra.mxu1 %v5588_v3 }
  0x30   :  { %4176 = vmatmul.mubr.f32.vlgmr.msra.gmra.mxu1 %v5591_v57  ;;  %4213 = vmatprep.subr.mxu1 %v6980_v13  ;;  %v433_v49 = vand.u32 4294901760, %v5596_v54 }
  0x31   :  { %4214 = vmatpush3.msra.mxu1 %v5216_v4  ;;  %4245 = vmatprep.mubr.msk.f32.mxu1 %vm5179_vm0, %v6980_v13 }
  0x32   :  { %4215 = vmatprep.subr.mxu1 %v6980_v13  ;;  %v434_v9 = vsub.f32 %v5596_v54, %v433_v49 }
  0x33   :  { %4216 = vmatpush3.msra.mxu1 %v5218_v5 }
  0x34   :  { %4217 = vmatprep.subr.mxu1 %v6980_v13  ;;  %v435_v32 = vand.u32 4294901760, %v434_v9  ;;  %v57_v9 = vrot.slane %v5675_v47, 1 }
  0x35   :  { %4218 = vmatpush3.msra.mxu1 %v5220_v6 }
  0x36   :  { %4219 = vmatprep.subr.mxu1 %v6980_v13  ;;  %4141 = vmatmul.mubr.f32.vlgmr.msra.gmra.mxu0 %v435_v32  ;;  %v5693_v32 = vmul.f32 0.036000773, %v38_v2 }
  0x37   :  { %4220 = vmatpush3.msra.mxu1 %v5232_v10  ;;  %4179 = vmatpush3.msra.mxu0 %v5250_v15 }
  0x38   :  { %4221 = vmatprep.subr.mxu1 %v6980_v13  ;;  %4180 = vmatprep.subr.mxu0 %v6980_v13  ;;  %6994 = vst [vmem:[#allocation56_spill] sm:$0xff] %v5693_v32  ;;  %v82_v47 = vrot.slane %v5693_v32, 2  ;;  %v5725_v32 = vmul.f32 0.26601171, %v38_v2 }
  0x39   :  { %4222 = vmatpush3.msra.mxu1 %v5234_v11  ;;  %4181 = vmatpush3.msra.mxu0 %v5253_v16 }
  0x3a   :  { %4223 = vmatprep.subr.mxu1 %v6980_v13  ;;  %4182 = vmatprep.subr.mxu0 %v6980_v13  ;;  %6999 = vst [vmem:[#allocation61_spill] sm:$0xff] %v5725_v32 }
  0x3b   :  { %4224 = vmatpush3.msra.mxu1 %v5236_v12  ;;  %4183 = vmatpush3.msra.mxu0 %v5258_v18 }
  0x3c   :  { %4225 = vmatprep.subr.mxu1 %v6980_v13  ;;  %4184 = vmatprep.subr.mxu0 %v6980_v13 }
  0x3d   :  { %4226 = vmatpush3.msra.mxu1 %v5255_v17  ;;  %4185 = vmatpush3.msra.mxu0 %v5265_v20 }
  0x3e   :  { %4227 = vmatprep.subr.mxu1 %v6980_v13  ;;  %4186 = vmatprep.subr.mxu0 %v6980_v13 }
  0x3f   :  { %4228 = vmatpush3.msra.mxu1 %v5280_v25  ;;  %4187 = vmatpush3.msra.mxu0 %v5268_v21 }
  0x40   :  { %4229 = vmatprep.subr.mxu1 %v6980_v13  ;;  %4188 = vmatprep.subr.mxu0 %v6980_v13 }
  0x41   :  { %4230 = vmatpush3.msra.mxu1 %v5289_v28  ;;  %4189 = vmatpush3.msra.mxu0 %v5295_v30 }
  0x42   :  { %4231 = vmatprep.subr.mxu1 %v6980_v13  ;;  %4190 = vmatprep.subr.mxu0 %v6980_v13 }
  0x43   :  { %4232 = vmatpush3.msra.mxu1 %v5318_v39  ;;  %4191 = vmatpush3.msra.mxu0 %v5308_v35 }
  0x44   :  { %4233 = vmatprep.subr.mxu1 %v6980_v13  ;;  %4192 = vmatprep.subr.mxu0 %v6980_v13 }
  0x45   :  { %4234 = vmatpush3.msra.mxu1 %v5328_v43  ;;  %4193 = vmatpush3.msra.mxu0 %v5337_v46 }
  0x46   :  { %4235 = vmatprep.subr.mxu1 %v6980_v13  ;;  %4194 = vmatprep.subr.mxu0 %v6980_v13 }
  0x47   :  { %4210 = vmatprep.mubr.msk.f32.mxu0 %vm5179_vm0, %v6980_v13  ;;  %4195 = vmatpush3.msra.mxu0 %v5358_v52 }
  0x48   :  { %4236 = vmatpush3.msra.mxu1 %v5334_v45  ;;  %4196 = vmatprep.subr.mxu0 %v6980_v13 }
  0x49   :  { %4237 = vmatprep.subr.mxu1 %v6980_v13  ;;  %4197 = vmatpush3.msra.mxu0 %v5370_v56 }
  0x4a   :  { %4238 = vmatpush3.msra.mxu1 %v5380_v58  ;;  %4198 = vmatprep.subr.mxu0 %v6980_v13 }
  0x4b   :  { %4239 = vmatprep.subr.mxu1 %v6980_v13  ;;  %4199 = vmatpush3.msra.mxu0 %v5394_v62 }
  0x4c   :  { %4240 = vmatpush3.msra.mxu1 %v5386_v60  ;;  %4200 = vmatprep.subr.mxu0 %v6980_v13 }
  0x4d   :  { %4241 = vmatprep.subr.mxu1 %v6980_v13  ;;  %4201 = vmatpush3.msra.mxu0 %v5404_v1 }
  0x4e   :  { %4242 = vmatpush3.msra.mxu1 %v5432_v26  ;;  %4202 = vmatprep.subr.mxu0 %v6980_v13 }
  0x4f   :  { %4243 = vmatprep.subr.mxu1 %v6980_v13  ;;  %4203 = vmatpush3.msra.mxu0 %v5517_v7 }
  0x50   :  { %4244 = vmatpush3.msra.mxu1 %v5498_v51  ;;  %4204 = vmatprep.subr.mxu0 %v6980_v13 }
  0x51   :  { %4246 = vmatmul.mubr.f32.vlgmr.msra.gmra.mxu1 %v433_v49  ;;  %4205 = vmatpush3.msra.mxu0 %v5526_v53  ;;  %v5690_v49 = vmul.f32 0.0010283801, %v38_v2 }
  0x52   :  { %4283 = vmatprep.subr.mxu1 %v6980_v13  ;;  %4206 = vmatprep.subr.mxu0 %v6980_v13 }
  0x53   :  { %4284 = vmatpush3.msra.mxu1 %v5216_v4  ;;  %4207 = vmatpush3.msra.mxu0 %v5530_v50  ;;  %6993 = vst [vmem:[#allocation55_spill] sm:$0xff] %v5690_v49  ;;  %v5714_v50 = vmul.f32 0.21300554, %v38_v2  ;;  %v206_v2 = vrot.slane %v5725_v32, 5  ;;  %v7003_v32 = vld [vmem:[#allocation30_spill] sm:$0xff] }
  0x54   :  { %4285 = vmatprep.subr.mxu1 %v6980_v13  ;;  %4208 = vmatprep.subr.mxu0 %v6980_v13 }
  0x55   :  { %4286 = vmatpush3.msra.mxu1 %v5218_v5  ;;  %4209 = vmatpush3.msra.mxu0 %v5542_v14  ;;  %v115_v14 = vrot.slane %v5700_v59, 3  ;;  %6997 = vst [vmem:[#allocation59_spill] sm:$0xff] %v5714_v50 }
  0x56   :  { %4287 = vmatprep.subr.mxu1 %v6980_v13  ;;  %4211 = vmatmul.mubr.f32.vlgmr.msra.gmra.mxu0 %v5596_v54  ;;  %v59_v54 = vadd.f32 %v57_v9, %v5690_v49 }
  0x57   :  { %4248 = vmatprep.subr.mxu0 %v6980_v13  ;;  %4288 = vmatpush3.msra.mxu1 %v5220_v6 }
  0x58   :  { %4249 = vmatpush3.msra.mxu0 %v5272_v22  ;;  %4289 = vmatprep.subr.mxu1 %v6980_v13  ;;  %v114_v22 = vrot.slane %v5697_v61, 3  ;;  %v84_v9 = vadd.f32 %v82_v47, %v59_v54  ;;  %v7001_v54 = vld [vmem:[#allocation25_spill] sm:$0xff] }
  0x59   :  { %4250 = vmatprep.subr.mxu0 %v6980_v13  ;;  %4290 = vmatpush3.msra.mxu1 %v5232_v10 }
  0x5a   :  { %4251 = vmatpush3.msra.mxu0 %v5275_v23  ;;  %4291 = vmatprep.subr.mxu1 %v6980_v13  ;;  %v5717_v23 = vmul.f32 0.21300554, %v5684_v48  ;;  %v116_v49 = vsel %vm106_vm1, %v114_v22, %v115_v14 }
  0x5b   :  { %4252 = vmatprep.subr.mxu0 %v6980_v13  ;;  %4292 = vmatpush3.msra.mxu1 %v5234_v11  ;;  %v118_v22 = vadd.f32 %v116_v49, %v84_v9  ;;  %v7002_v9 = vld [vmem:[#allocation28_spill] sm:$0xff] }
  0x5c   :  { %4253 = vmatpush3.msra.mxu0 %v5278_v24  ;;  %6998 = vst [vmem:[#allocation60_spill] sm:$0xff] %v5717_v23  ;;  %4293 = vmatprep.subr.mxu1 %v6980_v13  ;;  %v160_v24 = vrot.slane %v5714_v50, 4  ;;  %v161_v53 = vrot.slane %v5717_v23, 4 }
  0x5d   :  { %4254 = vmatprep.subr.mxu0 %v6980_v13  ;;  %4294 = vmatpush3.msra.mxu1 %v5236_v12 }
  0x5e   :  { %4255 = vmatpush3.msra.mxu0 %v5287_v27  ;;  %4295 = vmatprep.subr.mxu1 %v6980_v13  ;;  %v5733_v27 = vmul.f32 0.26601171, %v5684_v48  ;;  %v162_v14 = vsel %vm152_vm2, %v160_v24, %v161_v53  ;;  %v244_v53 = vrot.slane %v5714_v50, 6  ;;  %v7005_v50 = vld [vmem:[#allocation38_spill] sm:$0xff] }
  0x5f   :  { %4256 = vmatprep.subr.mxu0 %v6980_v13  ;;  %4296 = vmatpush3.msra.mxu1 %v5255_v17  ;;  %v164_v49 = vadd.f32 %v162_v14, %v118_v22  ;;  %v7004_v14 = vld [vmem:[#allocation33_spill] sm:$0xff] }
  0x60   :  { %4257 = vmatpush3.msra.mxu0 %v5292_v29  ;;  %7000 = vst [vmem:[#allocation62_spill] sm:$0xff] %v5733_v27  ;;  %4297 = vmatprep.subr.mxu1 %v6980_v13  ;;  %v207_v47 = vrot.slane %v5733_v27, 5  ;;  %v245_v27 = vrot.slane %v5717_v23, 6  ;;  %v271_v23 = vrot.slane %v5700_v59, 7 }
  0x61   :  { %4258 = vmatprep.subr.mxu0 %v6980_v13  ;;  %4298 = vmatpush3.msra.mxu1 %v5280_v25 }
  0x62   :  { %4259 = vmatpush3.msra.mxu0 %v5321_v40  ;;  %4299 = vmatprep.subr.mxu1 %v6980_v13  ;;  %v208_v24 = vsel %vm198_vm3, %v206_v2, %v207_v47  ;;  %v246_v2 = vsel %vm238_vm4, %v244_v53, %v245_v27  ;;  %v270_v47 = vrot.slane %v5697_v61, 7  ;;  %v5785_v53 = vmul.f32 0.036000773, %v5684_v48  ;;  %v7018_v61 = vld [vmem:[#allocation27_spill] sm:$0xff] }
  0x63   :  { %4260 = vmatprep.subr.mxu0 %v6980_v13  ;;  %4300 = vmatpush3.msra.mxu1 %v5289_v28  ;;  %v210_v22 = vadd.f32 %v208_v24, %v164_v49 }
  0x64   :  { %4261 = vmatpush3.msra.mxu0 %v5331_v44  ;;  %4301 = vmatprep.subr.mxu1 %v6980_v13  ;;  %v272_v27 = vsel %vm264_vm5, %v270_v47, %v271_v23  ;;  %7006 = vst [vmem:[#allocation25_spill] sm:$0xff] %v5785_v53  ;;  %v5802_v47 = vmul.f32 0.0010283801, %v5684_v48 }
  0x65   :  { %4262 = vmatprep.subr.mxu0 %v6980_v13  ;;  %4302 = vmatpush3.msra.mxu1 %v5318_v39  ;;  %v248_v49 = vadd.f32 %v246_v2, %v210_v22  ;;  %v5788_v22 = vmul.f32 0.007598758, %v5684_v48 }
  0x66   :  { %4263 = vmatpush3.msra.mxu0 %v7001_v54  ;;  %4303 = vmatprep.subr.mxu1 %v6980_v13  ;;  %7008 = vst [vmem:[#allocation30_spill] sm:$0xff] %v5802_v47  ;;  %v332_v48 = vrot.slane %v5802_v47, 2 }
  0x67   :  { %4264 = vmatprep.subr.mxu0 %v6980_v13  ;;  %4304 = vmatpush3.msra.mxu1 %v5328_v43  ;;  %v274_v24 = vadd.f32 %v272_v27, %v248_v49  ;;  %7007 = vst [vmem:[#allocation28_spill] sm:$0xff] %v5788_v22  ;;  %v307_v2 = vrot.slane %v5788_v22, 1  ;;  %v7009_v49 = vld [vmem:[#allocation18_spill] sm:$0xff] }
  0x68   :  { %4265 = vmatpush3.msra.mxu0 %v7002_v9  ;;  %4305 = vmatprep.subr.mxu1 %v6980_v13  ;;  %v7012_v22 = vld [vmem:[#allocation22_spill] sm:$0xff] }
  0x69   :  { %4266 = vmatprep.subr.mxu0 %v6980_v13  ;;  %4280 = vmatprep.mubr.msk.f32.mxu0 %vm5179_vm0, %v6980_v13  ;;  %v293_v23 = vadd.f32 %v5785_v53, %v274_v24  ;;  %v7011_v24 = vld [vmem:[#allocation21_spill] sm:$0xff] }
  0x6a   :  { %4267 = vmatpush3.msra.mxu0 %v7003_v32  ;;  %4306 = vmatpush3.msra.mxu1 %v5334_v45 }
  0x6b   :  { %4268 = vmatprep.subr.mxu0 %v6980_v13  ;;  %4307 = vmatprep.subr.mxu1 %v6980_v13  ;;  %v309_v27 = vadd.f32 %v307_v2, %v293_v23  ;;  %v7013_v23 = vld [vmem:[#allocation23_spill] sm:$0xff]  ;;  %v7014_v2 = vld [vmem:[#allocation37_spill] sm:$0xff] }
  0x6c   :  { %4269 = vmatpush3.msra.mxu0 %v7004_v14  ;;  %4308 = vmatpush3.msra.mxu1 %v5380_v58 }
  0x6d   :  { %4270 = vmatprep.subr.mxu0 %v6980_v13  ;;  %4309 = vmatprep.subr.mxu1 %v6980_v13  ;;  %v334_v53 = vadd.f32 %v332_v48, %v309_v27 }
  0x6e   :  { %4271 = vmatpush3.msra.mxu0 %v7005_v50  ;;  %4310 = vmatpush3.msra.mxu1 %v5386_v60 }
  0x6f   :  { %4272 = vmatprep.subr.mxu0 %v6980_v13  ;;  %4311 = vmatprep.subr.mxu1 %v6980_v13  ;;  %v5829_v47 = vand.u32 4294901760, %v334_v53 }
  0x70   :  { %4273 = vmatpush3.msra.mxu0 %v5539_v63  ;;  %4312 = vmatpush3.msra.mxu1 %v5432_v26 }
  0x71   :  { %4274 = vmatprep.subr.mxu0 %v6980_v13  ;;  %4313 = vmatprep.subr.mxu1 %v6980_v13  ;;  %v5840_v27 = vsub.f32 %v334_v53, %v5829_v47 }
  0x72   :  { %4275 = vmatpush3.msra.mxu0 %v5550_v37  ;;  %4314 = vmatpush3.msra.mxu1 %v5498_v51 }
  0x73   :  { %4276 = vmatprep.subr.mxu0 %v6980_v13  ;;  %4315 = vmatprep.mubr.msk.f32.mxu1 %vm5179_vm0, %v6980_v13  ;;  %v6910_v48 = vand.u32 4294901760, %v5840_v27 }
  0x74   :  { %4277 = vmatpush3.msra.mxu0 %v5553_v42  ;;  %4316 = vmatmul.mubr.f32.vlgmr.msra.gmra.mxu1 %v5591_v57 }
  0x75   :  { %4278 = vmatprep.subr.mxu0 %v6980_v13  ;;  %4353 = vmatprep.subr.mxu1 %v6980_v13  ;;  %v1075_v53 = vsub.f32 %v5840_v27, %v6910_v48  ;;  %v7017_v48 = vld [vmem:[#allocation50_spill] sm:$0xff] }
  0x76   :  { %4279 = vmatpush3.msra.mxu0 %v5560_v36  ;;  %4354 = vmatpush3.msra.mxu1 %v7009_v49 }
  0x77   :  { %4281 = vmatmul.mubr.f32.vlgmr.msra.gmra.mxu0 %v5591_v57  ;;  %4318 = vmatprep.subr.mxu0 %v6980_v13  ;;  %v7010_v57 = vld [vmem:[#allocation19_spill] sm:$0xff]  ;;  %v1076_v59 = vand.u32 4294901760, %v1075_v53  ;;  %v7016_v53 = vld [vmem:[#allocation48_spill] sm:$0xff] }
  0x78   :  { %4319 = vmatpush3.msra.mxu0 %v5216_v4  ;;  %4355 = vmatprep.subr.mxu1 %v6980_v13 }
  0x79   :  { %4320 = vmatprep.subr.mxu0 %v6980_v13  ;;  %4356 = vmatpush3.msra.mxu1 %v7010_v57 }
  0x7a   :  { %4321 = vmatpush3.msra.mxu0 %v5218_v5  ;;  %4357 = vmatprep.subr.mxu1 %v6980_v13 }
  0x7b   :  { %4322 = vmatprep.subr.mxu0 %v6980_v13  ;;  %4358 = vmatpush3.msra.mxu1 %v7011_v24 }
  0x7c   :  { %4323 = vmatpush3.msra.mxu0 %v5220_v6  ;;  %4359 = vmatprep.subr.mxu1 %v6980_v13 }
  0x7d   :  { %4324 = vmatprep.subr.mxu0 %v6980_v13  ;;  %4360 = vmatpush3.msra.mxu1 %v7012_v22 }
  0x7e   :  { %4325 = vmatpush3.msra.mxu0 %v5232_v10  ;;  %4361 = vmatprep.subr.mxu1 %v6980_v13 }
  0x7f   :  { %4326 = vmatprep.subr.mxu0 %v6980_v13  ;;  %4362 = vmatpush3.msra.mxu1 %v7013_v23 }
  0x80   :  { %4327 = vmatpush3.msra.mxu0 %v5234_v11  ;;  %4363 = vmatprep.subr.mxu1 %v6980_v13 }
  0x81   :  { %4328 = vmatprep.subr.mxu0 %v6980_v13  ;;  %4364 = vmatpush3.msra.mxu1 %v7014_v2 }
  0x82   :  { %4329 = vmatpush3.msra.mxu0 %v5236_v12  ;;  %4365 = vmatprep.subr.mxu1 %v6980_v13 }
  0x83   :  { %4330 = vmatprep.subr.mxu0 %v6980_v13  ;;  %4366 = vmatpush3.msra.mxu1 %v5442_v33 }
  0x84   :  { %4331 = vmatpush3.msra.mxu0 %v5255_v17  ;;  %4367 = vmatprep.subr.mxu1 %v6980_v13 }
  0x85   :  { %4332 = vmatprep.subr.mxu0 %v6980_v13  ;;  %4368 = vmatpush3.msra.mxu1 %v5444_v34 }
  0x86   :  { %4333 = vmatpush3.msra.mxu0 %v5280_v25  ;;  %4369 = vmatprep.subr.mxu1 %v6980_v13 }
  0x87   :  { %4334 = vmatprep.subr.mxu0 %v6980_v13  ;;  %4370 = vmatpush3.msra.mxu1 %v5450_v38 }
  0x88   :  { %4335 = vmatpush3.msra.mxu0 %v5289_v28  ;;  %4371 = vmatprep.subr.mxu1 %v6980_v13 }
  0x89   :  { %4336 = vmatprep.subr.mxu0 %v6980_v13  ;;  %4372 = vmatpush3.msra.mxu1 %v5505_v41 }
  0x8a   :  { %4337 = vmatpush3.msra.mxu0 %v5318_v39  ;;  %4373 = vmatprep.subr.mxu1 %v6980_v13 }
  0x8b   :  { %4338 = vmatprep.subr.mxu0 %v6980_v13  ;;  %4374 = vmatpush3.msra.mxu1 %v5510_v8 }
  0x8c   :  { %4339 = vmatpush3.msra.mxu0 %v5328_v43  ;;  %4375 = vmatprep.subr.mxu1 %v6980_v13 }
  0x8d   :  { %4340 = vmatprep.subr.mxu0 %v6980_v13  ;;  %4376 = vmatpush3.msra.mxu1 %v5512_v31 }
  0x8e   :  { %4341 = vmatpush3.msra.mxu0 %v5334_v45  ;;  %4350 = vmatprep.mubr.msk.f32.mxu0 %vm5179_vm0, %v6980_v13 }
  0x8f   :  { %4342 = vmatprep.subr.mxu0 %v6980_v13  ;;  %4377 = vmatprep.subr.mxu1 %v6980_v13 }
  0x90   :  { %4343 = vmatpush3.msra.mxu0 %v5380_v58  ;;  %4378 = vmatpush3.msra.mxu1 %v5571_v0 }
  0x91   :  { %4344 = vmatprep.subr.mxu0 %v6980_v13  ;;  %4379 = vmatprep.subr.mxu1 %v6980_v13 }
  0x92   :  { %4345 = vmatpush3.msra.mxu0 %v5386_v60  ;;  %4380 = vmatpush3.msra.mxu1 %v5577_v19 }
  0x93   :  { %4346 = vmatprep.subr.mxu0 %v6980_v13  ;;  %4381 = vmatprep.subr.mxu1 %v6980_v13 }
  0x94   :  { %4347 = vmatpush3.msra.mxu0 %v5432_v26  ;;  %4382 = vmatpush3.msra.mxu1 %v5584_v55 }
  0x95   :  { %4348 = vmatprep.subr.mxu0 %v6980_v13  ;;  %4383 = vmatprep.subr.mxu1 %v6980_v13 }
  0x96   :  { %4349 = vmatpush3.msra.mxu0 %v5498_v51  ;;  %4384 = vmatpush3.msra.mxu1 %v5588_v3 }
  0x97   :  { %4388 = vmatprep.subr.mxu0 %v6980_v13  ;;  %4351 = vmatmul.mubr.f32.vlgmr.msra.gmra.mxu0 %v1076_v59  ;;  %v7015_v59 = vld [vmem:[#allocation47_spill] sm:$0xff] }
  0x98   :  { %4389 = vmatpush3.msra.mxu0 %v5250_v15  ;;  %4385 = vmatprep.mubr.msk.f32.mxu1 %vm5179_vm0, %v6980_v13 }
  0x99   :  { %4390 = vmatprep.subr.mxu0 %v6980_v13  ;;  %4386 = vmatmul.mubr.f32.vlgmr.msra.gmra.mxu1 %v5829_v47 }
  0x9a   :  { %4391 = vmatpush3.msra.mxu0 %v5253_v16  ;;  %4423 = vmatprep.subr.mxu1 %v6980_v13 }
  0x9b   :  { %4392 = vmatprep.subr.mxu0 %v6980_v13  ;;  %4424 = vmatpush3.msra.mxu1 %v5216_v4 }
  0x9c   :  { %4393 = vmatpush3.msra.mxu0 %v5258_v18  ;;  %4425 = vmatprep.subr.mxu1 %v6980_v13  ;;  %v7031_v18 = vld [vmem:[#allocation42_spill] sm:$0xff] }
  0x9d   :  { %4394 = vmatprep.subr.mxu0 %v6980_v13  ;;  %4426 = vmatpush3.msra.mxu1 %v5218_v5 }
  0x9e   :  { %4395 = vmatpush3.msra.mxu0 %v5265_v20  ;;  %4427 = vmatprep.subr.mxu1 %v6980_v13 }
  0x9f   :  { %4396 = vmatprep.subr.mxu0 %v6980_v13  ;;  %4428 = vmatpush3.msra.mxu1 %v5220_v6 }
  0xa0   :  { %4397 = vmatpush3.msra.mxu0 %v5268_v21  ;;  %4429 = vmatprep.subr.mxu1 %v6980_v13 }
  0xa1   :  { %4398 = vmatprep.subr.mxu0 %v6980_v13  ;;  %4430 = vmatpush3.msra.mxu1 %v5232_v10 }
  0xa2   :  { %4399 = vmatpush3.msra.mxu0 %v5295_v30  ;;  %4431 = vmatprep.subr.mxu1 %v6980_v13  ;;  %v7026_v30 = vld [vmem:[#allocation40_spill] sm:$0xff] }
  0xa3   :  { %4400 = vmatprep.subr.mxu0 %v6980_v13  ;;  %4432 = vmatpush3.msra.mxu1 %v5234_v11 }
  0xa4   :  { %4401 = vmatpush3.msra.mxu0 %v5308_v35  ;;  %4433 = vmatprep.subr.mxu1 %v6980_v13  ;;  %v7025_v35 = vld [vmem:[#allocation34_spill] sm:$0xff] }
  0xa5   :  { %4402 = vmatprep.subr.mxu0 %v6980_v13  ;;  %4434 = vmatpush3.msra.mxu1 %v5236_v12  ;;  %v5962_v21 = vmul.f32 %v7026_v30, %v7025_v35  ;;  %v166_v55 = vmul.f32 %v7031_v18, %v7025_v35 }
  0xa6   :  { %4403 = vmatpush3.msra.mxu0 %v5337_v46  ;;  %4435 = vmatprep.subr.mxu1 %v6980_v13  ;;  %v7024_v46 = vld [vmem:[#allocation39_spill] sm:$0xff] }
  0xa7   :  { %4404 = vmatprep.subr.mxu0 %v6980_v13  ;;  %4436 = vmatpush3.msra.mxu1 %v5255_v17  ;;  %v124_v20 = vrot.slane %v5962_v21, 3 }
  0xa8   :  { %4405 = vmatpush3.msra.mxu0 %v5358_v52  ;;  %4437 = vmatprep.subr.mxu1 %v6980_v13 }
  0xa9   :  { %4406 = vmatprep.subr.mxu0 %v6980_v13  ;;  %4438 = vmatpush3.msra.mxu1 %v5280_v25 }
  0xaa   :  { %4407 = vmatpush3.msra.mxu0 %v5370_v56  ;;  %4439 = vmatprep.subr.mxu1 %v6980_v13  ;;  %v7023_v56 = vld [vmem:[#allocation36_spill] sm:$0xff] }
  0xab   :  { %4408 = vmatprep.subr.mxu0 %v6980_v13  ;;  %4440 = vmatpush3.msra.mxu1 %v5289_v28  ;;  %v85_v52 = vmul.f32 %v7023_v56, %v7018_v61 }
  0xac   :  { %4409 = vmatpush3.msra.mxu0 %v5394_v62  ;;  %4441 = vmatprep.subr.mxu1 %v6980_v13  ;;  %v7022_v62 = vld [vmem:[#allocation12_spill] sm:$0xff] }
  0xad   :  { %4410 = vmatprep.subr.mxu0 %v6980_v13  ;;  %4442 = vmatpush3.msra.mxu1 %v5318_v39  ;;  %v87_v56 = vrot.slane %v85_v52, 2 }
  0xae   :  { %4411 = vmatpush3.msra.mxu0 %v5404_v1  ;;  %4443 = vmatprep.subr.mxu1 %v6980_v13  ;;  %v7020_v1 = vld [vmem:[#allocation11_spill] sm:$0xff] }
  0xaf   :  { %4412 = vmatprep.subr.mxu0 %v6980_v13  ;;  %4444 = vmatpush3.msra.mxu1 %v5328_v43 }
  0xb0   :  { %4413 = vmatpush3.msra.mxu0 %v5517_v7  ;;  %4445 = vmatprep.subr.mxu1 %v6980_v13 }
  0xb1   :  { %4414 = vmatprep.subr.mxu0 %v6980_v13  ;;  %4420 = vmatprep.mubr.msk.f32.mxu0 %vm5179_vm0, %v6980_v13 }
  0xb2   :  { %4415 = vmatpush3.msra.mxu0 %v7015_v59  ;;  %4446 = vmatpush3.msra.mxu1 %v5334_v45  ;;  %v7019_v59 = vld [vmem:[#allocation35_spill] sm:$0xff] }
  0xb3   :  { %4416 = vmatprep.subr.mxu0 %v6980_v13  ;;  %4447 = vmatprep.subr.mxu1 %v6980_v13  ;;  %v60_v7 = vmul.f32 %v7019_v59, %v7018_v61 }
  0xb4   :  { %4417 = vmatpush3.msra.mxu0 %v7016_v53  ;;  %4448 = vmatpush3.msra.mxu1 %v5380_v58  ;;  %v7021_v53 = vld [vmem:[#allocation32_spill] sm:$0xff] }
  0xb5   :  { %4418 = vmatprep.subr.mxu0 %v6980_v13  ;;  %4449 = vmatprep.subr.mxu1 %v6980_v13  ;;  %v62_v59 = vrot.slane %v60_v7, 1  ;;  %v7028_v7 = vld [vmem:[#allocation14_spill] sm:$0xff] }
  0xb6   :  { %4419 = vmatpush3.msra.mxu0 %v7017_v48  ;;  %4450 = vmatpush3.msra.mxu1 %v5386_v60  ;;  %v44_v48 = vmul.f32 %v7021_v53, %v7018_v61  ;;  %v7027_v53 = vld [vmem:[#allocation13_spill] sm:$0xff] }
  0xb7   :  { %4421 = vmatmul.mubr.f32.vlgmr.msra.gmra.mxu0 %v5840_v27  ;;  %4458 = vmatprep.subr.mxu0 %v6980_v13 }
  0xb8   :  { %4459 = vmatpush3.msra.mxu0 %v7020_v1  ;;  %4451 = vmatprep.subr.mxu1 %v6980_v13  ;;  %v5958_v1 = vmul.f32 %v7024_v46, %v7018_v61  ;;  %v7029_v46 = vand.u32 4294901760, %v5840_v27  ;;  %v64_v30 = vadd.f32 %v62_v59, %v44_v48  ;;  %v170_v48 = vrot.slane %v166_v55, 4  ;;  %v7032_v59 = vld [vmem:[#allocation43_spill] sm:$0xff] }
  0xb9   :  { %4460 = vmatprep.subr.mxu0 %v6980_v13  ;;  %4452 = vmatpush3.msra.mxu1 %v5432_v26  ;;  %v211_v18 = vmul.f32 %v7032_v59, %v7018_v61  ;;  %v7050_v59 = vld [vmem:[#allocation47_spill] sm:$0xff] }
  0xba   :  { %4461 = vmatpush3.msra.mxu0 %v7022_v62  ;;  %4453 = vmatprep.subr.mxu1 %v6980_v13  ;;  %v123_v62 = vrot.slane %v5958_v1, 3 }
  0xbb   :  { %4462 = vmatprep.subr.mxu0 %v6980_v13  ;;  %4454 = vmatpush3.msra.mxu1 %v5498_v51 }
  0xbc   :  { %4463 = vmatpush3.msra.mxu0 %v7027_v53  ;;  %4455 = vmatprep.mubr.msk.f32.mxu1 %vm5179_vm0, %v6980_v13  ;;  %v7030_v53 = vld [vmem:[#allocation41_spill] sm:$0xff]  ;;  %v125_v52 = vsel %vm106_vm1, %v123_v62, %v124_v20 }
  0xbd   :  { %4464 = vmatprep.subr.mxu0 %v6980_v13  ;;  %4456 = vmatmul.mubr.f32.vlgmr.msra.gmra.mxu1 %v7029_v46  ;;  %v165_v3 = vmul.f32 %v7030_v53, %v7018_v61  ;;  %v89_v46 = vadd.f32 %v87_v56, %v64_v30  ;;  %v7033_v53 = vld [vmem:[#allocation44_spill] sm:$0xff]  ;;  %v250_v61 = vrot.slane %v166_v55, 6  ;;  %v275_v55 = vrot.slane %v5958_v1, 7 }
  0xbe   :  { %4465 = vmatpush3.msra.mxu0 %v7028_v7  ;;  %4493 = vmatprep.subr.mxu1 %v6980_v13 }
  0xbf   :  { %4466 = vmatprep.subr.mxu0 %v6980_v13  ;;  %4494 = vmatpush3.msra.mxu1 %v5216_v4  ;;  %v169_v27 = vrot.slane %v165_v3, 4  ;;  %v127_v20 = vadd.f32 %v125_v52, %v89_v46  ;;  %v276_v52 = vrot.slane %v5962_v21, 7 }
  0xc0   :  { %4467 = vmatpush3.msra.mxu0 %v5292_v29  ;;  %4495 = vmatprep.subr.mxu1 %v6980_v13  ;;  %v212_v29 = vmul.f32 %v7033_v53, %v7025_v35  ;;  %v215_v35 = vrot.slane %v211_v18, 5  ;;  %v7049_v53 = vld [vmem:[#allocation45_spill] sm:$0xff] }
  0xc1   :  { %4468 = vmatprep.subr.mxu0 %v6980_v13  ;;  %4496 = vmatpush3.msra.mxu1 %v5218_v5  ;;  %v171_v30 = vsel %vm152_vm2, %v169_v27, %v170_v48  ;;  %v277_v1 = vsel %vm264_vm5, %v275_v55, %v276_v52  ;;  %v5165_v48 = vld [vmem:[%s6829_s1 + $0x8] sm:$0xff] }
  0xc2   :  { %4469 = vmatpush3.msra.mxu0 %v5321_v40  ;;  %4497 = vmatprep.subr.mxu1 %v6980_v13  ;;  %v216_v56 = vrot.slane %v212_v29, 5  ;;  %v173_v62 = vadd.f32 %v171_v30, %v127_v20  ;;  %v249_v29 = vrot.slane %v165_v3, 6  ;;  %v7034_v20 = vld [vmem:[#allocation49_spill] sm:$0xff] }
  0xc3   :  { %4470 = vmatprep.subr.mxu0 %v6980_v13  ;;  %4498 = vmatpush3.msra.mxu1 %v5220_v6  ;;  %v294_v30 = vmul.f32 %v5165_v48, %v7034_v20 }
  0xc4   :  { %4471 = vmatpush3.msra.mxu0 %v5331_v44  ;;  %4499 = vmatprep.subr.mxu1 %v6980_v13  ;;  %v217_v18 = vsel %vm198_vm3, %v215_v35, %v216_v56  ;;  %v251_v3 = vsel %vm238_vm4, %v249_v29, %v250_v61  ;;  %v7035_v35 = vld [vmem:[#allocation46_spill] sm:$0xff]  ;;  %v7036_v29 = vld [vmem:[#allocation51_spill] sm:$0xff] }
  0xc5   :  { %4472 = vmatprep.subr.mxu0 %v6980_v13  ;;  %4500 = vmatpush3.msra.mxu1 %v5232_v10  ;;  %v219_v46 = vadd.f32 %v217_v18, %v173_v62  ;;  %v310_v56 = vmul.f32 %v5165_v48, %v7035_v35  ;;  %v335_v61 = vmul.f32 %v5165_v48, %v7036_v29  ;;  %v7048_v35 = vld [vmem:[#allocation31_spill] sm:$0xff] }
  0xc6   :  { %4473 = vmatpush3.msra.mxu0 %v7001_v54  ;;  %4501 = vmatprep.subr.mxu1 %v6980_v13 }
  0xc7   :  { %4474 = vmatprep.subr.mxu0 %v6980_v13  ;;  %4502 = vmatpush3.msra.mxu1 %v5234_v11  ;;  %v253_v27 = vadd.f32 %v251_v3, %v219_v46  ;;  %v312_v18 = vrot.slane %v310_v56, 1  ;;  %v337_v3 = vrot.slane %v335_v61, 2  ;;  %v7037_v61 = vld [vmem:[#allocation52_spill] sm:$0xff] }
  0xc8   :  { %4475 = vmatpush3.msra.mxu0 %v7002_v9  ;;  %4503 = vmatprep.subr.mxu1 %v6980_v13 }
  0xc9   :  { %4476 = vmatprep.subr.mxu0 %v6980_v13  ;;  %4504 = vmatpush3.msra.mxu1 %v5236_v12  ;;  %v279_v21 = vadd.f32 %v277_v1, %v253_v27 }
  0xca   :  { %4477 = vmatpush3.msra.mxu0 %v7003_v32  ;;  %4505 = vmatprep.subr.mxu1 %v6980_v13 }
  0xcb   :  { %4478 = vmatprep.subr.mxu0 %v6980_v13  ;;  %4506 = vmatpush3.msra.mxu1 %v5255_v17  ;;  %v295_v62 = vadd.f32 %v294_v30, %v279_v21 }
  0xcc   :  { %4479 = vmatpush3.msra.mxu0 %v7004_v14  ;;  %4507 = vmatprep.subr.mxu1 %v6980_v13 }
  0xcd   :  { %4480 = vmatprep.subr.mxu0 %v6980_v13  ;;  %4508 = vmatpush3.msra.mxu1 %v5280_v25  ;;  %v314_v46 = vadd.f32 %v312_v18, %v295_v62 }
  0xce   :  { %4481 = vmatpush3.msra.mxu0 %v7005_v50  ;;  %4509 = vmatprep.subr.mxu1 %v6980_v13 }
  0xcf   :  { %4482 = vmatprep.subr.mxu0 %v6980_v13  ;;  %4510 = vmatpush3.msra.mxu1 %v5289_v28  ;;  %v339_v55 = vadd.f32 %v337_v3, %v314_v46  ;;  %v7038_v46 = vld [vmem:[#allocation8_spill] sm:$0xff]  ;;  %v7039_v3 = vld [vmem:[#allocation53_spill] sm:$0xff] }
  0xd0   :  { %4483 = vmatpush3.msra.mxu0 %v5539_v63  ;;  %4511 = vmatprep.subr.mxu1 %v6980_v13 }
  0xd1   :  { %4484 = vmatprep.subr.mxu0 %v6980_v13  ;;  %4512 = vmatpush3.msra.mxu1 %v5318_v39 }
  0xd2   :  { %4485 = vmatpush3.msra.mxu0 %v5550_v37  ;;  %4513 = vmatprep.subr.mxu1 %v6980_v13 }
  0xd3   :  { %4486 = vmatprep.subr.mxu0 %v6980_v13  ;;  %4514 = vmatpush3.msra.mxu1 %v5328_v43 }
  0xd4   :  { %4487 = vmatpush3.msra.mxu0 %v5553_v42  ;;  %4515 = vmatprep.subr.mxu1 %v6980_v13 }
  0xd5   :  { %4488 = vmatprep.subr.mxu0 %v6980_v13  ;;  %4490 = vmatprep.mubr.msk.f32.mxu0 %vm5179_vm0, %v6980_v13 }
  0xd6   :  { %4489 = vmatpush3.msra.mxu0 %v5560_v36  ;;  %4516 = vmatpush3.msra.mxu1 %v5334_v45 }
  0xd7   :  { %4491 = vmatmul.mubr.f32.vlgmr.msra.gmra.mxu0 %v5829_v47  ;;  %4517 = vmatprep.subr.mxu1 %v6980_v13 }
  0xd8   :  { %4528 = vmatprep.subr.mxu0 %v6980_v13  ;;  %4518 = vmatpush3.msra.mxu1 %v5380_v58 }
  0xd9   :  { %4529 = vmatpush3.msra.mxu0 %v5216_v4  ;;  %4519 = vmatprep.subr.mxu1 %v6980_v13 }
  0xda   :  { %4530 = vmatprep.subr.mxu0 %v6980_v13  ;;  %4520 = vmatpush3.msra.mxu1 %v5386_v60 }
  0xdb   :  { %4531 = vmatpush3.msra.mxu0 %v5218_v5  ;;  %4521 = vmatprep.subr.mxu1 %v6980_v13 }
  0xdc   :  { %4532 = vmatprep.subr.mxu0 %v6980_v13  ;;  %4522 = vmatpush3.msra.mxu1 %v5432_v26 }
  0xdd   :  { %4533 = vmatpush3.msra.mxu0 %v5220_v6  ;;  %4523 = vmatprep.subr.mxu1 %v6980_v13 }
  0xde   :  { %4534 = vmatprep.subr.mxu0 %v6980_v13  ;;  %4524 = vmatpush3.msra.mxu1 %v5498_v51 }
  0xdf   :  { %4525 = vmatprep.mubr.msk.f32.mxu1 %vm5179_vm0, %v6980_v13  ;;  %4535 = vmatpush3.msra.mxu0 %v5232_v10 }
  0xe0   :  { %4526 = vmatmul.mubr.f32.vlgmr.msra.gmra.mxu1 %v5829_v47  ;;  %4536 = vmatprep.subr.mxu0 %v6980_v13  ;;  %v6079_v47 = vand.u32 4294901760, %v339_v55 }
  0xe1   :  { %4563 = vmatprep.subr.mxu1 %v6980_v13  ;;  %4537 = vmatpush3.msra.mxu0 %v5234_v11 }
  0xe2   :  { %4564 = vmatpush3.msra.mxu1 %v7009_v49  ;;  %4538 = vmatprep.subr.mxu0 %v6980_v13  ;;  %v6090_v52 = vsub.f32 %v339_v55, %v6079_v47  ;;  %v7040_v55 = vld [vmem:[#allocation9_spill] sm:$0xff] }
  0xe3   :  { %4565 = vmatprep.subr.mxu1 %v6980_v13  ;;  %4539 = vmatpush3.msra.mxu0 %v5236_v12 }
  0xe4   :  { %4566 = vmatpush3.msra.mxu1 %v7010_v57  ;;  %4540 = vmatprep.subr.mxu0 %v6980_v13  ;;  %v6940_v27 = vand.u32 4294901760, %v6090_v52 }
  0xe5   :  { %4567 = vmatprep.subr.mxu1 %v6980_v13  ;;  %4541 = vmatpush3.msra.mxu0 %v5255_v17 }
  0xe6   :  { %4568 = vmatpush3.msra.mxu1 %v7011_v24  ;;  %4542 = vmatprep.subr.mxu0 %v6980_v13  ;;  %v1716_v21 = vsub.f32 %v6090_v52, %v6940_v27  ;;  %v7047_v27 = vld [vmem:[#allocation29_spill] sm:$0xff] }
  0xe7   :  { %4569 = vmatprep.subr.mxu1 %v6980_v13  ;;  %4543 = vmatpush3.msra.mxu0 %v5280_v25 }
  0xe8   :  { %4570 = vmatpush3.msra.mxu1 %v7012_v22  ;;  %4544 = vmatprep.subr.mxu0 %v6980_v13  ;;  %v1717_v30 = vand.u32 4294901760, %v1716_v21  ;;  %v7042_v21 = vld [vmem:[#allocation16_spill] sm:$0xff] }
  0xe9   :  { %4571 = vmatprep.subr.mxu1 %v6980_v13  ;;  %4545 = vmatpush3.msra.mxu0 %v5289_v28 }
  0xea   :  { %4572 = vmatpush3.msra.mxu1 %v7013_v23  ;;  %4546 = vmatprep.subr.mxu0 %v6980_v13 }
  0xeb   :  { %4573 = vmatprep.subr.mxu1 %v6980_v13  ;;  %4547 = vmatpush3.msra.mxu0 %v5318_v39 }
  0xec   :  { %4574 = vmatpush3.msra.mxu1 %v7014_v2  ;;  %4548 = vmatprep.subr.mxu0 %v6980_v13 }
  0xed   :  { %4575 = vmatprep.subr.mxu1 %v6980_v13  ;;  %4549 = vmatpush3.msra.mxu0 %v5328_v43 }
  0xee   :  { %4576 = vmatpush3.msra.mxu1 %v5442_v33  ;;  %4550 = vmatprep.subr.mxu0 %v6980_v13 }
  0xef   :  { %4577 = vmatprep.subr.mxu1 %v6980_v13  ;;  %4551 = vmatpush3.msra.mxu0 %v5334_v45 }
  0xf0   :  { %4578 = vmatpush3.msra.mxu1 %v5444_v34  ;;  %v588_v1 = vpop.f32.mrf.mxu1  ;;  %4552 = vmatprep.subr.mxu0 %v6980_v13 }
  0xf1   :  { %4579 = vmatprep.subr.mxu1 %v6980_v13  ;;  %4553 = vmatpush3.msra.mxu0 %v5380_v58 }
  0xf2   :  { %4580 = vmatpush3.msra.mxu1 %v5450_v38  ;;  %v4177_v48 = vpop.f32.mrf.mxu1  ;;  %4554 = vmatprep.subr.mxu0 %v6980_v13 }
  0xf3   :  { %4581 = vmatprep.subr.mxu1 %v6980_v13  ;;  %4555 = vmatpush3.msra.mxu0 %v5386_v60  ;;  %v7043_v48 = vld [vmem:[#allocation17_spill] sm:$0xff] }
  0xf4   :  { %4582 = vmatpush3.msra.mxu1 %v5505_v41  ;;  %4556 = vmatprep.subr.mxu0 %v6980_v13 }
  0xf5   :  { %4583 = vmatprep.subr.mxu1 %v6980_v13  ;;  %4557 = vmatpush3.msra.mxu0 %v5432_v26 }
  0xf6   :  { %4584 = vmatpush3.msra.mxu1 %v5510_v8  ;;  %4558 = vmatprep.subr.mxu0 %v6980_v13  ;;  %v437_v56 = vpop.f32.mrf.mxu0 }
  0xf7   :  { %4585 = vmatprep.subr.mxu1 %v6980_v13  ;;  %4559 = vmatpush3.msra.mxu0 %v5498_v51  ;;  %v6124_v62 = vadd.f32 %v588_v1, %v437_v56  ;;  %v7041_v1 = vld [vmem:[#allocation10_spill] sm:$0xff]  ;;  %v7045_v56 = vld [vmem:[#allocation24_spill] sm:$0xff] }
  0xf8   :  { %4586 = vmatpush3.msra.mxu1 %v5512_v31  ;;  %4560 = vmatprep.mubr.msk.f32.mxu0 %vm5179_vm0, %v6980_v13  ;;  %v4142_v18 = vpop.f32.mrf.mxu0 }
  0xf9   :  { %4587 = vmatprep.subr.mxu1 %v6980_v13  ;;  %4598 = vmatprep.subr.mxu0 %v6980_v13  ;;  %v7046_v18 = vld [vmem:[#allocation26_spill] sm:$0xff] }
  0xfa   :  { %4561 = vmatmul.mubr.f32.vlgmr.msra.gmra.mxu0 %v1717_v30  ;;  %4588 = vmatpush3.msra.mxu1 %v5571_v0  ;;  %v7044_v30 = vld [vmem:[#allocation20_spill] sm:$0xff] }
  0xfb   :  { %4599 = vmatpush3.msra.mxu0 %v5250_v15  ;;  %4589 = vmatprep.subr.mxu1 %v6980_v13 }
  0xfc   :  { %4600 = vmatprep.subr.mxu0 %v6980_v13  ;;  %4590 = vmatpush3.msra.mxu1 %v5577_v19 }
  0xfd   :  { %4601 = vmatpush3.msra.mxu0 %v5253_v16  ;;  %4591 = vmatprep.subr.mxu1 %v6980_v13 }
  0xfe   :  { %4602 = vmatprep.subr.mxu0 %v6980_v13  ;;  %4592 = vmatpush3.msra.mxu1 %v7037_v61 }
  0xff   :  { %4603 = vmatpush3.msra.mxu0 %v7038_v46  ;;  %4593 = vmatprep.subr.mxu1 %v6980_v13  ;;  %v7063_v46 = vld [vmem:[#allocation60_spill] sm:$0xff] }
 0x100   :  { %4604 = vmatprep.subr.mxu0 %v6980_v13  ;;  %4594 = vmatpush3.msra.mxu1 %v7039_v3 }
 0x101   :  { %4595 = vmatprep.mubr.msk.f32.mxu1 %vm5179_vm0, %v6980_v13  ;;  %4605 = vmatpush3.msra.mxu0 %v7040_v55  ;;  %v7062_v55 = vld [vmem:[#allocation59_spill] sm:$0xff] }
 0x102   :  { %4596 = vmatmul.mubr.f32.vlgmr.msra.gmra.mxu1 %v6079_v47  ;;  %4606 = vmatprep.subr.mxu0 %v6980_v13 }
 0x103   :  { %4633 = vmatprep.subr.mxu1 %v6980_v13  ;;  %4607 = vmatpush3.msra.mxu0 %v7041_v1  ;;  %v7060_v1 = vld [vmem:[#allocation13_spill] sm:$0xff] }
 0x104   :  { %4634 = vmatpush3.msra.mxu1 %v5216_v4  ;;  %4608 = vmatprep.subr.mxu0 %v6980_v13 }
 0x105   :  { %4635 = vmatprep.subr.mxu1 %v6980_v13  ;;  %4609 = vmatpush3.msra.mxu0 %v7042_v21  ;;  %v6229_v21 = vld [vmem:[%s6830_s2 + $0x8] sm:$0xff] }
 0x106   :  { %4636 = vmatpush3.msra.mxu1 %v5218_v5  ;;  %4610 = vmatprep.subr.mxu0 %v6980_v13  ;;  %v175_v61 = vmul.f32 %v6229_v21, %v7063_v46 }
 0x107   :  { %4637 = vmatprep.subr.mxu1 %v6980_v13  ;;  %4611 = vmatpush3.msra.mxu0 %v7043_v48 }
 0x108   :  { %4638 = vmatpush3.msra.mxu1 %v5220_v6  ;;  %4612 = vmatprep.subr.mxu0 %v6980_v13 }
 0x109   :  { %4639 = vmatprep.subr.mxu1 %v6980_v13  ;;  %4613 = vmatpush3.msra.mxu0 %v7044_v30 }
 0x10a   :  { %4640 = vmatpush3.msra.mxu1 %v5232_v10  ;;  %4614 = vmatprep.subr.mxu0 %v6980_v13 }
 0x10b   :  { %4641 = vmatprep.subr.mxu1 %v6980_v13  ;;  %4615 = vmatpush3.msra.mxu0 %v7045_v56  ;;  %v7057_v56 = vld [vmem:[#allocation56_spill] sm:$0xff] }
 0x10c   :  { %4642 = vmatpush3.msra.mxu1 %v5234_v11  ;;  %4616 = vmatprep.subr.mxu0 %v6980_v13 }
 0x10d   :  { %4643 = vmatprep.subr.mxu1 %v6980_v13  ;;  %4617 = vmatpush3.msra.mxu0 %v7046_v18  ;;  %v7052_v18 = vld [vmem:[#allocation50_spill] sm:$0xff] }
 0x10e   :  { %4644 = vmatpush3.msra.mxu1 %v5236_v12  ;;  %4618 = vmatprep.subr.mxu0 %v6980_v13 }
 0x10f   :  { %4645 = vmatprep.subr.mxu1 %v6980_v13  ;;  %4619 = vmatpush3.msra.mxu0 %v7047_v27  ;;  %v7051_v27 = vld [vmem:[#allocation48_spill] sm:$0xff] }
 0x110   :  { %4646 = vmatpush3.msra.mxu1 %v5255_v17  ;;  %4620 = vmatprep.subr.mxu0 %v6980_v13 }
 0x111   :  { %4647 = vmatprep.subr.mxu1 %v6980_v13  ;;  %v781_v29 = vpop.f32.mrf.mxu1  ;;  %4621 = vmatpush3.msra.mxu0 %v7048_v35 }
 0x112   :  { %4648 = vmatpush3.msra.mxu1 %v5280_v25  ;;  %4622 = vmatprep.subr.mxu0 %v6980_v13 }
 0x113   :  { %4649 = vmatprep.subr.mxu1 %v6980_v13  ;;  %v4247_v20 = vpop.f32.mrf.mxu1  ;;  %4623 = vmatpush3.msra.mxu0 %v7049_v53 }
 0x114   :  { %4650 = vmatpush3.msra.mxu1 %v5289_v28  ;;  %4624 = vmatprep.subr.mxu0 %v6980_v13 }
 0x115   :  { %4651 = vmatprep.subr.mxu1 %v6980_v13  ;;  %4625 = vmatpush3.msra.mxu0 %v7050_v59 }
 0x116   :  { %4652 = vmatpush3.msra.mxu1 %v5318_v39  ;;  %4626 = vmatprep.subr.mxu0 %v6980_v13  ;;  %v692_v35 = vpop.f32.mrf.mxu0 }
 0x117   :  { %4653 = vmatprep.subr.mxu1 %v6980_v13  ;;  %4627 = vmatpush3.msra.mxu0 %v7051_v27  ;;  %v693_v20 = vadd.f32 %v692_v35, %v6124_v62  ;;  %v6206_v35 = vld [vmem:[%s6830_s2] sm:$0xff] }
 0x118   :  { %4654 = vmatpush3.msra.mxu1 %v5328_v43  ;;  %4628 = vmatprep.subr.mxu0 %v6980_v13  ;;  %v4212_v53 = vpop.f32.mrf.mxu0  ;;  %v90_v30 = vmul.f32 %v6206_v35, %v7057_v56  ;;  %v7061_v56 = vand.u32 4294901760, %v6090_v52  ;;  %v174_v3 = vmul.f32 %v6206_v35, %v7062_v55  ;;  %v179_v55 = vrot.slane %v175_v61, 4 }
 0x119   :  { %4655 = vmatprep.subr.mxu1 %v6980_v13  ;;  %4629 = vmatpush3.msra.mxu0 %v7052_v18  ;;  %v6197_v59 = vadd.f32 %v781_v29, %v693_v20  ;;  %v7053_v53 = vld [vmem:[#allocation54_spill] sm:$0xff]  ;;  %v7054_v29 = vld [vmem:[#allocation11_spill] sm:$0xff]  ;;  %v7055_v20 = vld [vmem:[#allocation12_spill] sm:$0xff] }
 0x11a   :  { %4630 = vmatprep.mubr.msk.f32.mxu0 %vm5179_vm0, %v6980_v13  ;;  %4656 = vmatpush3.msra.mxu1 %v5334_v45  ;;  %v65_v62 = vmul.f32 %v6206_v35, %v7053_v53  ;;  %v7056_v18 = vld [vmem:[#allocation55_spill] sm:$0xff]  ;;  %v178_v46 = vrot.slane %v174_v3, 4 }
 0x11b   :  { %4631 = vmatmul.mubr.f32.vlgmr.msra.gmra.mxu0 %v6090_v52  ;;  %4657 = vmatprep.subr.mxu1 %v6980_v13  ;;  %v46_v27 = vmul.f32 %v6206_v35, %v7056_v18 }
 0x11c   :  { %4668 = vmatprep.subr.mxu0 %v6980_v13  ;;  %4658 = vmatpush3.msra.mxu1 %v5380_v58  ;;  %v67_v53 = vrot.slane %v65_v62, 1 }
 0x11d   :  { %4669 = vmatpush3.msra.mxu0 %v7054_v29  ;;  %4659 = vmatprep.subr.mxu1 %v6980_v13  ;;  %v7058_v29 = vld [vmem:[#allocation57_spill] sm:$0xff] }
 0x11e   :  { %4670 = vmatprep.subr.mxu0 %v6980_v13  ;;  %4660 = vmatpush3.msra.mxu1 %v5386_v60  ;;  %v6224_v48 = vmul.f32 %v6206_v35, %v7058_v29  ;;  %v69_v62 = vadd.f32 %v67_v53, %v46_v27  ;;  %v92_v29 = vrot.slane %v90_v30, 2  ;;  %v7065_v30 = vld [vmem:[#allocation61_spill] sm:$0xff] }
 0x11f   :  { %4671 = vmatpush3.msra.mxu0 %v7055_v20  ;;  %4661 = vmatprep.subr.mxu1 %v6980_v13  ;;  %v7059_v20 = vld [vmem:[#allocation58_spill] sm:$0xff]  ;;  %v220_v53 = vmul.f32 %v6206_v35, %v7065_v30 }
 0x120   :  { %4672 = vmatprep.subr.mxu0 %v6980_v13  ;;  %v6233_v18 = vmul.f32 %v6229_v21, %v7059_v20  ;;  %4662 = vmatpush3.msra.mxu1 %v5432_v26  ;;  %v132_v20 = vrot.slane %v6224_v48, 3  ;;  %v94_v52 = vadd.f32 %v92_v29, %v69_v62  ;;  %v180_v62 = vsel %vm152_vm2, %v178_v46, %v179_v55 }
 0x121   :  { %4673 = vmatpush3.msra.mxu0 %v7060_v1  ;;  %4663 = vmatprep.subr.mxu1 %v6980_v13  ;;  %v224_v29 = vrot.slane %v220_v53, 5  ;;  %v255_v46 = vrot.slane %v175_v61, 6 }
 0x122   :  { %4674 = vmatprep.subr.mxu0 %v6980_v13  ;;  %4664 = vmatpush3.msra.mxu1 %v5498_v51  ;;  %v133_v1 = vrot.slane %v6233_v18, 3  ;;  %v281_v53 = vrot.slane %v6233_v18, 7 }
 0x123   :  { %4665 = vmatprep.mubr.msk.f32.mxu1 %vm5179_vm0, %v6980_v13  ;;  %4675 = vmatpush3.msra.mxu0 %v7028_v7  ;;  %v7064_v7 = vld [vmem:[#allocation15_spill] sm:$0xff] }
 0x124   :  { %4666 = vmatmul.mubr.f32.vlgmr.msra.gmra.mxu1 %v7061_v56  ;;  %4676 = vmatprep.subr.mxu0 %v6980_v13  ;;  %v134_v27 = vsel %vm106_vm1, %v132_v20, %v133_v1  ;;  %v7066_v56 = vld [vmem:[#allocation62_spill] sm:$0xff] }
 0x125   :  { %4703 = vmatprep.subr.mxu1 %v6980_v13  ;;  %4677 = vmatpush3.msra.mxu0 %v7064_v7  ;;  %v221_v7 = vmul.f32 %v6229_v21, %v7066_v56  ;;  %v136_v1 = vadd.f32 %v134_v27, %v94_v52 }
 0x126   :  { %4704 = vmatpush3.msra.mxu1 %v5216_v4  ;;  %4678 = vmatprep.subr.mxu0 %v6980_v13 }
 0x127   :  { %4705 = vmatprep.subr.mxu1 %v6980_v13  ;;  %4679 = vmatpush3.msra.mxu0 %v5321_v40  ;;  %v225_v20 = vrot.slane %v221_v7, 5  ;;  %v182_v52 = vadd.f32 %v180_v62, %v136_v1  ;;  %v254_v7 = vrot.slane %v174_v3, 6  ;;  %v280_v3 = vrot.slane %v6224_v48, 7 }
 0x128   :  { %4706 = vmatpush3.msra.mxu1 %v5218_v5  ;;  %4680 = vmatprep.subr.mxu0 %v6980_v13 }
 0x129   :  { %4707 = vmatprep.subr.mxu1 %v6980_v13  ;;  %4681 = vmatpush3.msra.mxu0 %v5331_v44  ;;  %v226_v27 = vsel %vm198_vm3, %v224_v29, %v225_v20  ;;  %v256_v61 = vsel %vm238_vm4, %v254_v7, %v255_v46  ;;  %v282_v18 = vsel %vm264_vm5, %v280_v3, %v281_v53  ;;  %v7068_v7 = vld [vmem:[#allocation28_spill] sm:$0xff] }
 0x12a   :  { %4708 = vmatpush3.msra.mxu1 %v5220_v6  ;;  %4682 = vmatprep.subr.mxu0 %v6980_v13  ;;  %v228_v55 = vadd.f32 %v226_v27, %v182_v52  ;;  %v7067_v52 = vld [vmem:[#allocation25_spill] sm:$0xff]  ;;  %v315_v46 = vmul.f32 %v6229_v21, %v7068_v7 }
 0x12b   :  { %4709 = vmatprep.subr.mxu1 %v6980_v13  ;;  %4683 = vmatpush3.msra.mxu0 %v7001_v54  ;;  %v296_v27 = vmul.f32 %v6229_v21, %v7067_v52 }
 0x12c   :  { %4710 = vmatpush3.msra.mxu1 %v5232_v10  ;;  %4684 = vmatprep.subr.mxu0 %v6980_v13  ;;  %v258_v29 = vadd.f32 %v256_v61, %v228_v55  ;;  %v7069_v61 = vld [vmem:[#allocation30_spill] sm:$0xff] }
 0x12d   :  { %4711 = vmatprep.subr.mxu1 %v6980_v13  ;;  %4685 = vmatpush3.msra.mxu0 %v7002_v9  ;;  %v340_v3 = vmul.f32 %v6229_v21, %v7069_v61  ;;  %v7072_v61 = vld [vmem:[#allocation53_spill] sm:$0xff] }
 0x12e   :  { %4712 = vmatpush3.msra.mxu1 %v5234_v11  ;;  %4686 = vmatprep.subr.mxu0 %v6980_v13 }
 0x12f   :  { %4713 = vmatprep.subr.mxu1 %v6980_v13  ;;  %4687 = vmatpush3.msra.mxu0 %v7003_v32 }
 0x130   :  { %4714 = vmatpush3.msra.mxu1 %v5236_v12  ;;  %4688 = vmatprep.subr.mxu0 %v6980_v13 }
 0x131   :  { %4715 = vmatprep.subr.mxu1 %v6980_v13  ;;  %4689 = vmatpush3.msra.mxu0 %v7004_v14 }
 0x132   :  { %4716 = vmatpush3.msra.mxu1 %v5255_v17  ;;  %4690 = vmatprep.subr.mxu0 %v6980_v13 }
 0x133   :  { %4717 = vmatprep.subr.mxu1 %v6980_v13  ;;  %4691 = vmatpush3.msra.mxu0 %v7005_v50 }
 0x134   :  { %4718 = vmatpush3.msra.mxu1 %v5280_v25  ;;  %4692 = vmatprep.subr.mxu0 %v6980_v13  ;;  %v987_v30 = vpop.f32.mrf.mxu1 }
 0x135   :  { %4719 = vmatprep.subr.mxu1 %v6980_v13  ;;  %4693 = vmatpush3.msra.mxu0 %v5539_v63 }
 0x136   :  { %4720 = vmatpush3.msra.mxu1 %v5289_v28  ;;  %4694 = vmatprep.subr.mxu0 %v6980_v13  ;;  %v4317_v1 = vpop.f32.mrf.mxu1 }
 0x137   :  { %4721 = vmatprep.subr.mxu1 %v6980_v13  ;;  %v900_v56 = vpop.f32.mrf.mxu0  ;;  %4695 = vmatpush3.msra.mxu0 %v5550_v37 }
 0x138   :  { %4722 = vmatpush3.msra.mxu1 %v5318_v39  ;;  %v901_v62 = vadd.f32 %v900_v56, %v6197_v59  ;;  %4696 = vmatprep.subr.mxu0 %v6980_v13  ;;  %v284_v59 = vadd.f32 %v282_v18, %v258_v29  ;;  %v342_v56 = vrot.slane %v340_v3, 2  ;;  %v7073_v3 = vld [vmem:[#allocation9_spill] sm:$0xff] }
 0x139   :  { %4723 = vmatprep.subr.mxu1 %v6980_v13  ;;  %v4282_v48 = vpop.f32.mrf.mxu0  ;;  %4697 = vmatpush3.msra.mxu0 %v5553_v42 }
 0x13a   :  { %4724 = vmatpush3.msra.mxu1 %v5328_v43  ;;  %v6307_v20 = vadd.f32 %v987_v30, %v901_v62  ;;  %4698 = vmatprep.subr.mxu0 %v6980_v13  ;;  %v297_v55 = vadd.f32 %v296_v27, %v284_v59  ;;  %v317_v30 = vrot.slane %v315_v46, 1 }
 0x13b   :  { %4725 = vmatprep.subr.mxu1 %v6980_v13  ;;  %4699 = vmatpush3.msra.mxu0 %v5560_v36 }
 0x13c   :  { %4700 = vmatprep.mubr.msk.f32.mxu0 %vm5179_vm0, %v6980_v13  ;;  %4726 = vmatpush3.msra.mxu1 %v5334_v45  ;;  %v319_v53 = vadd.f32 %v317_v30, %v297_v55  ;;  %v7070_v55 = vld [vmem:[#allocation52_spill] sm:$0xff] }
 0x13d   :  { %4701 = vmatmul.mubr.f32.vlgmr.msra.gmra.mxu0 %v6079_v47  ;;  %4727 = vmatprep.subr.mxu1 %v6980_v13  ;;  %v7071_v30 = vld [vmem:[#allocation8_spill] sm:$0xff] }
 0x13e   :  { %4738 = vmatprep.subr.mxu0 %v6980_v13  ;;  %4728 = vmatpush3.msra.mxu1 %v5380_v58  ;;  %v344_v1 = vadd.f32 %v342_v56, %v319_v53  ;;  %v7074_v53 = vld [vmem:[#allocation10_spill] sm:$0xff]  ;;  %v7075_v56 = vld [vmem:[#allocation16_spill] sm:$0xff] }
 0x13f   :  { %4739 = vmatpush3.msra.mxu0 %v5216_v4  ;;  %4729 = vmatprep.subr.mxu1 %v6980_v13 }
 0x140   :  { %4740 = vmatprep.subr.mxu0 %v6980_v13  ;;  %4730 = vmatpush3.msra.mxu1 %v5386_v60 }
 0x141   :  { %4741 = vmatpush3.msra.mxu0 %v5218_v5  ;;  %4731 = vmatprep.subr.mxu1 %v6980_v13 }
 0x142   :  { %4742 = vmatprep.subr.mxu0 %v6980_v13  ;;  %4732 = vmatpush3.msra.mxu1 %v5432_v26 }
 0x143   :  { %4743 = vmatpush3.msra.mxu0 %v5220_v6  ;;  %4733 = vmatprep.subr.mxu1 %v6980_v13 }
 0x144   :  { %4744 = vmatprep.subr.mxu0 %v6980_v13  ;;  %4734 = vmatpush3.msra.mxu1 %v5498_v51 }
 0x145   :  { %4735 = vmatprep.mubr.msk.f32.mxu1 %vm5179_vm0, %v6980_v13  ;;  %4745 = vmatpush3.msra.mxu0 %v5232_v10 }
 0x146   :  { %4736 = vmatmul.mubr.f32.vlgmr.msra.gmra.mxu1 %v6079_v47  ;;  %4746 = vmatprep.subr.mxu0 %v6980_v13  ;;  %v6353_v47 = vand.u32 4294901760, %v344_v1 }
 0x147   :  { %4773 = vmatprep.subr.mxu1 %v6980_v13  ;;  %4747 = vmatpush3.msra.mxu0 %v5234_v11 }
 0x148   :  { %4774 = vmatpush3.msra.mxu1 %v7009_v49  ;;  %4748 = vmatprep.subr.mxu0 %v6980_v13  ;;  %v6364_v62 = vsub.f32 %v344_v1, %v6353_v47  ;;  %v7076_v1 = vld [vmem:[#allocation17_spill] sm:$0xff] }
 0x149   :  { %4775 = vmatprep.subr.mxu1 %v6980_v13  ;;  %4749 = vmatpush3.msra.mxu0 %v5236_v12 }
 0x14a   :  { %4776 = vmatpush3.msra.mxu1 %v7010_v57  ;;  %4750 = vmatprep.subr.mxu0 %v6980_v13  ;;  %v6942_v29 = vand.u32 4294901760, %v6364_v62 }
 0x14b   :  { %4777 = vmatprep.subr.mxu1 %v6980_v13  ;;  %4751 = vmatpush3.msra.mxu0 %v5255_v17 }
 0x14c   :  { %4778 = vmatpush3.msra.mxu1 %v7011_v24  ;;  %4752 = vmatprep.subr.mxu0 %v6980_v13  ;;  %v2357_v18 = vsub.f32 %v6364_v62, %v6942_v29 }
 0x14d   :  { %4779 = vmatprep.subr.mxu1 %v6980_v13  ;;  %4753 = vmatpush3.msra.mxu0 %v5280_v25 }
 0x14e   :  { %4780 = vmatpush3.msra.mxu1 %v7012_v22  ;;  %4754 = vmatprep.subr.mxu0 %v6980_v13  ;;  %v2358_v7 = vand.u32 4294901760, %v2357_v18  ;;  %v7078_v18 = vld [vmem:[#allocation24_spill] sm:$0xff] }
 0x14f   :  { %4781 = vmatprep.subr.mxu1 %v6980_v13  ;;  %4755 = vmatpush3.msra.mxu0 %v5289_v28 }
 0x150   :  { %4782 = vmatpush3.msra.mxu1 %v7013_v23  ;;  %4756 = vmatprep.subr.mxu0 %v6980_v13 }
 0x151   :  { %4783 = vmatprep.subr.mxu1 %v6980_v13  ;;  %4757 = vmatpush3.msra.mxu0 %v5318_v39 }
 0x152   :  { %4784 = vmatpush3.msra.mxu1 %v7014_v2  ;;  %4758 = vmatprep.subr.mxu0 %v6980_v13 }
 0x153   :  { %4785 = vmatprep.subr.mxu1 %v6980_v13  ;;  %4759 = vmatpush3.msra.mxu0 %v5328_v43 }
 0x154   :  { %4786 = vmatpush3.msra.mxu1 %v5442_v33  ;;  %4760 = vmatprep.subr.mxu0 %v6980_v13 }
 0x155   :  { %4787 = vmatprep.subr.mxu1 %v6980_v13  ;;  %4761 = vmatpush3.msra.mxu0 %v5334_v45 }
 0x156   :  { %4788 = vmatpush3.msra.mxu1 %v5444_v34  ;;  %4762 = vmatprep.subr.mxu0 %v6980_v13 }
 0x157   :  { %4789 = vmatprep.subr.mxu1 %v6980_v13  ;;  %v1078_v48 = vpop.f32.mrf.mxu0  ;;  %4763 = vmatpush3.msra.mxu0 %v5380_v58 }
 0x158   :  { %4790 = vmatpush3.msra.mxu1 %v5450_v38  ;;  %4764 = vmatprep.subr.mxu0 %v6980_v13 }
 0x159   :  { %4791 = vmatprep.subr.mxu1 %v6980_v13  ;;  %v4352_v59 = vpop.f32.mrf.mxu0  ;;  %4765 = vmatpush3.msra.mxu0 %v5386_v60  ;;  %v1229_v52 = vpop.f32.mrf.mxu1 }
 0x15a   :  { %4792 = vmatpush3.msra.mxu1 %v5505_v41  ;;  %4766 = vmatprep.subr.mxu0 %v6980_v13  ;;  %v1230_v27 = vadd.f32 %v1229_v52, %v1078_v48  ;;  %v7077_v48 = vld [vmem:[#allocation20_spill] sm:$0xff]  ;;  %v7079_v59 = vld [vmem:[#allocation26_spill] sm:$0xff]  ;;  %v7080_v52 = vld [vmem:[#allocation29_spill] sm:$0xff] }
 0x15b   :  { %4793 = vmatprep.subr.mxu1 %v6980_v13  ;;  %4767 = vmatpush3.msra.mxu0 %v5432_v26  ;;  %v4387_v46 = vpop.f32.mrf.mxu1 }
 0x15c   :  { %4794 = vmatpush3.msra.mxu1 %v5510_v8  ;;  %4768 = vmatprep.subr.mxu0 %v6980_v13  ;;  %v7081_v46 = vld [vmem:[#allocation31_spill] sm:$0xff] }
 0x15d   :  { %4795 = vmatprep.subr.mxu1 %v6980_v13  ;;  %4769 = vmatpush3.msra.mxu0 %v5498_v51 }
 0x15e   :  { %4796 = vmatpush3.msra.mxu1 %v5512_v31  ;;  %4770 = vmatprep.mubr.msk.f32.mxu0 %vm5179_vm0, %v6980_v13 }
 0x15f   :  { %4797 = vmatprep.subr.mxu1 %v6980_v13  ;;  %4808 = vmatprep.subr.mxu0 %v6980_v13 }
 0x160   :  { %4771 = vmatmul.mubr.f32.vlgmr.msra.gmra.mxu0 %v2358_v7  ;;  %4798 = vmatpush3.msra.mxu1 %v5571_v0 }
 0x161   :  { %4809 = vmatpush3.msra.mxu0 %v5250_v15  ;;  %4799 = vmatprep.subr.mxu1 %v6980_v13 }
 0x162   :  { %4810 = vmatprep.subr.mxu0 %v6980_v13  ;;  %4800 = vmatpush3.msra.mxu1 %v5577_v19 }
 0x163   :  { %4811 = vmatpush3.msra.mxu0 %v5253_v16  ;;  %4801 = vmatprep.subr.mxu1 %v6980_v13 }
 0x164   :  { %4812 = vmatprep.subr.mxu0 %v6980_v13  ;;  %4802 = vmatpush3.msra.mxu1 %v7070_v55  ;;  %v7097_v55 = vld [vmem:[#allocation42_spill] sm:$0xff] }
 0x165   :  { %4813 = vmatpush3.msra.mxu0 %v7071_v30  ;;  %4803 = vmatprep.subr.mxu1 %v6980_v13  ;;  %v184_v16 = vmul.f32 %v6229_v21, %v7097_v55 }
 0x166   :  { %4814 = vmatprep.subr.mxu0 %v6980_v13  ;;  %4804 = vmatpush3.msra.mxu1 %v7072_v61  ;;  %v7096_v61 = vld [vmem:[#allocation41_spill] sm:$0xff] }
 0x167   :  { %4805 = vmatprep.mubr.msk.f32.mxu1 %vm5179_vm0, %v6980_v13  ;;  %4815 = vmatpush3.msra.mxu0 %v7073_v3  ;;  %v183_v30 = vmul.f32 %v6206_v35, %v7096_v61  ;;  %v188_v61 = vrot.slane %v184_v16, 4 }
 0x168   :  { %4806 = vmatmul.mubr.f32.vlgmr.msra.gmra.mxu1 %v6353_v47  ;;  %4816 = vmatprep.subr.mxu0 %v6980_v13 }
 0x169   :  { %4843 = vmatprep.subr.mxu1 %v6980_v13  ;;  %4817 = vmatpush3.msra.mxu0 %v7074_v53  ;;  %v7092_v53 = vld [vmem:[#allocation40_spill] sm:$0xff]  ;;  %v187_v55 = vrot.slane %v183_v30, 4 }
 0x16a   :  { %4844 = vmatpush3.msra.mxu1 %v5216_v4  ;;  %4818 = vmatprep.subr.mxu0 %v6980_v13  ;;  %v6494_v3 = vmul.f32 %v6229_v21, %v7092_v53 }
 0x16b   :  { %4845 = vmatprep.subr.mxu1 %v6980_v13  ;;  %4819 = vmatpush3.msra.mxu0 %v7075_v56 }
 0x16c   :  { %4846 = vmatpush3.msra.mxu1 %v5218_v5  ;;  %4820 = vmatprep.subr.mxu0 %v6980_v13 }
 0x16d   :  { %4847 = vmatprep.subr.mxu1 %v6980_v13  ;;  %4821 = vmatpush3.msra.mxu0 %v7076_v1 }
 0x16e   :  { %4848 = vmatpush3.msra.mxu1 %v5220_v6  ;;  %4822 = vmatprep.subr.mxu0 %v6980_v13 }
 0x16f   :  { %4849 = vmatprep.subr.mxu1 %v6980_v13  ;;  %4823 = vmatpush3.msra.mxu0 %v7077_v48  ;;  %v7090_v48 = vld [vmem:[#allocation36_spill] sm:$0xff] }
 0x170   :  { %4850 = vmatpush3.msra.mxu1 %v5232_v10  ;;  %4824 = vmatprep.subr.mxu0 %v6980_v13  ;;  %v95_v1 = vmul.f32 %v6206_v35, %v7090_v48  ;;  %v7094_v48 = vld [vmem:[#allocation14_spill] sm:$0xff] }
 0x171   :  { %4851 = vmatprep.subr.mxu1 %v6980_v13  ;;  %4825 = vmatpush3.msra.mxu0 %v7078_v18  ;;  %v7082_v18 = vld [vmem:[#allocation45_spill] sm:$0xff] }
 0x172   :  { %4852 = vmatpush3.msra.mxu1 %v5234_v11  ;;  %4826 = vmatprep.subr.mxu0 %v6980_v13 }
 0x173   :  { %4853 = vmatprep.subr.mxu1 %v6980_v13  ;;  %4827 = vmatpush3.msra.mxu0 %v7079_v59 }
 0x174   :  { %4854 = vmatpush3.msra.mxu1 %v5236_v12  ;;  %4828 = vmatprep.subr.mxu0 %v6980_v13 }
 0x175   :  { %4855 = vmatprep.subr.mxu1 %v6980_v13  ;;  %4829 = vmatpush3.msra.mxu0 %v7080_v52  ;;  %v7083_v52 = vld [vmem:[#allocation47_spill] sm:$0xff] }
 0x176   :  { %4856 = vmatpush3.msra.mxu1 %v5255_v17  ;;  %4830 = vmatprep.subr.mxu0 %v6980_v13 }
 0x177   :  { %4857 = vmatprep.subr.mxu1 %v6980_v13  ;;  %v1333_v7 = vpop.f32.mrf.mxu0  ;;  %4831 = vmatpush3.msra.mxu0 %v7081_v46 }
 0x178   :  { %4858 = vmatpush3.msra.mxu1 %v5280_v25  ;;  %v1334_v29 = vadd.f32 %v1333_v7, %v1230_v27  ;;  %4832 = vmatprep.subr.mxu0 %v6980_v13  ;;  %v7084_v27 = vld [vmem:[#allocation48_spill] sm:$0xff] }
 0x179   :  { %4859 = vmatprep.subr.mxu1 %v6980_v13  ;;  %v4422_v59 = vpop.f32.mrf.mxu0  ;;  %4833 = vmatpush3.msra.mxu0 %v7082_v18  ;;  %v7085_v18 = vld [vmem:[#allocation50_spill] sm:$0xff] }
 0x17a   :  { %4860 = vmatpush3.msra.mxu1 %v5289_v28  ;;  %4834 = vmatprep.subr.mxu0 %v6980_v13 }
 0x17b   :  { %4861 = vmatprep.subr.mxu1 %v6980_v13  ;;  %4835 = vmatpush3.msra.mxu0 %v7083_v52 }
 0x17c   :  { %4862 = vmatpush3.msra.mxu1 %v5318_v39  ;;  %4836 = vmatprep.subr.mxu0 %v6980_v13 }
 0x17d   :  { %4863 = vmatprep.subr.mxu1 %v6980_v13  ;;  %4837 = vmatpush3.msra.mxu0 %v7084_v27  ;;  %v1422_v59 = vpop.f32.mrf.mxu1  ;;  %v7086_v27 = vld [vmem:[#allocation35_spill] sm:$0xff] }
 0x17e   :  { %4864 = vmatpush3.msra.mxu1 %v5328_v43  ;;  %4838 = vmatprep.subr.mxu0 %v6980_v13  ;;  %v6465_v7 = vadd.f32 %v1422_v59, %v1334_v29  ;;  %v70_v46 = vmul.f32 %v6206_v35, %v7086_v27  ;;  %v7087_v29 = vld [vmem:[#allocation11_spill] sm:$0xff]  ;;  %v7089_v59 = vld [vmem:[#allocation32_spill] sm:$0xff] }
 0x17f   :  { %4865 = vmatprep.subr.mxu1 %v6980_v13  ;;  %4839 = vmatpush3.msra.mxu0 %v7085_v18  ;;  %v4457_v52 = vpop.f32.mrf.mxu1  ;;  %v48_v18 = vmul.f32 %v6206_v35, %v7089_v59 }
 0x180   :  { %4840 = vmatprep.mubr.msk.f32.mxu0 %vm5179_vm0, %v6980_v13  ;;  %4866 = vmatpush3.msra.mxu1 %v5334_v45  ;;  %v7088_v52 = vld [vmem:[#allocation12_spill] sm:$0xff]  ;;  %v72_v27 = vrot.slane %v70_v46, 1  ;;  %v7095_v46 = vand.u32 4294901760, %v6364_v62 }
 0x181   :  { %4841 = vmatmul.mubr.f32.vlgmr.msra.gmra.mxu0 %v6364_v62  ;;  %4867 = vmatprep.subr.mxu1 %v6980_v13 }
 0x182   :  { %4878 = vmatprep.subr.mxu0 %v6980_v13  ;;  %4868 = vmatpush3.msra.mxu1 %v5380_v58  ;;  %v74_v53 = vadd.f32 %v72_v27, %v48_v18  ;;  %v7099_v18 = vld [vmem:[#allocation43_spill] sm:$0xff] }
 0x183   :  { %4879 = vmatpush3.msra.mxu0 %v7087_v29  ;;  %4869 = vmatprep.subr.mxu1 %v6980_v13  ;;  %v7091_v29 = vld [vmem:[#allocation39_spill] sm:$0xff]  ;;  %v229_v27 = vmul.f32 %v6206_v35, %v7099_v18 }
 0x184   :  { %4880 = vmatprep.subr.mxu0 %v6980_v13  ;;  %4870 = vmatpush3.msra.mxu1 %v5386_v60  ;;  %v6490_v56 = vmul.f32 %v6206_v35, %v7091_v29  ;;  %v97_v29 = vrot.slane %v95_v1, 2  ;;  %v189_v35 = vsel %vm152_vm2, %v187_v55, %v188_v61  ;;  %v260_v55 = vrot.slane %v184_v16, 6 }
 0x185   :  { %4881 = vmatpush3.msra.mxu0 %v7088_v52  ;;  %4871 = vmatprep.subr.mxu1 %v6980_v13  ;;  %v7093_v52 = vld [vmem:[#allocation13_spill] sm:$0xff] }
 0x186   :  { %4882 = vmatprep.subr.mxu0 %v6980_v13  ;;  %4872 = vmatpush3.msra.mxu1 %v5432_v26  ;;  %v141_v59 = vrot.slane %v6490_v56, 3  ;;  %v99_v62 = vadd.f32 %v97_v29, %v74_v53  ;;  %v233_v53 = vrot.slane %v229_v27, 5 }
 0x187   :  { %4883 = vmatpush3.msra.mxu0 %v7093_v52  ;;  %4873 = vmatprep.subr.mxu1 %v6980_v13  ;;  %v142_v52 = vrot.slane %v6494_v3, 3 }
 0x188   :  { %4884 = vmatprep.subr.mxu0 %v6980_v13  ;;  %4874 = vmatpush3.msra.mxu1 %v5498_v51 }
 0x189   :  { %4875 = vmatprep.mubr.msk.f32.mxu1 %vm5179_vm0, %v6980_v13  ;;  %4885 = vmatpush3.msra.mxu0 %v7094_v48  ;;  %v7098_v48 = vld [vmem:[#allocation15_spill] sm:$0xff]  ;;  %v143_v1 = vsel %vm106_vm1, %v141_v59, %v142_v52 }
 0x18a   :  { %4876 = vmatmul.mubr.f32.vlgmr.msra.gmra.mxu1 %v7095_v46  ;;  %4886 = vmatprep.subr.mxu0 %v6980_v13  ;;  %v7100_v46 = vld [vmem:[#allocation44_spill] sm:$0xff]  ;;  %v145_v52 = vadd.f32 %v143_v1, %v99_v62  ;;  %v259_v1 = vrot.slane %v183_v30, 6  ;;  %v285_v30 = vrot.slane %v6490_v56, 7 }
 0x18b   :  { %4913 = vmatprep.subr.mxu1 %v6980_v13  ;;  %4887 = vmatpush3.msra.mxu0 %v7098_v48  ;;  %v230_v48 = vmul.f32 %v6229_v21, %v7100_v46 }
 0x18c   :  { %4914 = vmatpush3.msra.mxu1 %v5216_v4  ;;  %4888 = vmatprep.subr.mxu0 %v6980_v13  ;;  %v191_v59 = vadd.f32 %v189_v35, %v145_v52  ;;  %v261_v16 = vsel %vm238_vm4, %v259_v1, %v260_v55 }
 0x18d   :  { %4915 = vmatprep.subr.mxu1 %v6980_v13  ;;  %4889 = vmatpush3.msra.mxu0 %v5321_v40  ;;  %v234_v29 = vrot.slane %v230_v48, 5 }
 0x18e   :  { %4916 = vmatpush3.msra.mxu1 %v5218_v5  ;;  %4890 = vmatprep.subr.mxu0 %v6980_v13 }
 0x18f   :  { %4917 = vmatprep.subr.mxu1 %v6980_v13  ;;  %4891 = vmatpush3.msra.mxu0 %v5331_v44  ;;  %v235_v48 = vsel %vm198_vm3, %v233_v53, %v234_v29  ;;  %v7101_v29 = vld [vmem:[#allocation49_spill] sm:$0xff] }
 0x190   :  { %4918 = vmatpush3.msra.mxu1 %v5220_v6  ;;  %4892 = vmatprep.subr.mxu0 %v6980_v13  ;;  %v237_v27 = vadd.f32 %v235_v48, %v191_v59  ;;  %v298_v59 = vmul.f32 %v6229_v21, %v7101_v29  ;;  %v7115_v29 = vld [vmem:[#allocation29_spill] sm:$0xff] }
 0x191   :  { %4919 = vmatprep.subr.mxu1 %v6980_v13  ;;  %4893 = vmatpush3.msra.mxu0 %v7001_v54 }
 0x192   :  { %4920 = vmatpush3.msra.mxu1 %v5232_v10  ;;  %4894 = vmatprep.subr.mxu0 %v6980_v13  ;;  %v263_v46 = vadd.f32 %v261_v16, %v237_v27 }
 0x193   :  { %4921 = vmatprep.subr.mxu1 %v6980_v13  ;;  %4895 = vmatpush3.msra.mxu0 %v7002_v9 }
 0x194   :  { %4922 = vmatpush3.msra.mxu1 %v5234_v11  ;;  %4896 = vmatprep.subr.mxu0 %v6980_v13 }
 0x195   :  { %4923 = vmatprep.subr.mxu1 %v6980_v13  ;;  %4897 = vmatpush3.msra.mxu0 %v7003_v32 }
 0x196   :  { %4924 = vmatpush3.msra.mxu1 %v5236_v12  ;;  %4898 = vmatprep.subr.mxu0 %v6980_v13 }
 0x197   :  { %4925 = vmatprep.subr.mxu1 %v6980_v13  ;;  %v1541_v62 = vpop.f32.mrf.mxu0  ;;  %4899 = vmatpush3.msra.mxu0 %v7004_v14 }
 0x198   :  { %4926 = vmatpush3.msra.mxu1 %v5255_v17  ;;  %v1542_v61 = vadd.f32 %v1541_v62, %v6465_v7  ;;  %4900 = vmatprep.subr.mxu0 %v6980_v13  ;;  %v286_v7 = vrot.slane %v6494_v3, 7  ;;  %v7102_v62 = vld [vmem:[#allocation46_spill] sm:$0xff] }
 0x199   :  { %4927 = vmatprep.subr.mxu1 %v6980_v13  ;;  %v4492_v18 = vpop.f32.mrf.mxu0  ;;  %4901 = vmatpush3.msra.mxu0 %v7005_v50  ;;  %v320_v48 = vmul.f32 %v6229_v21, %v7102_v62 }
 0x19a   :  { %4928 = vmatpush3.msra.mxu1 %v5280_v25  ;;  %4902 = vmatprep.subr.mxu0 %v6980_v13  ;;  %v287_v56 = vsel %vm264_vm5, %v285_v30, %v286_v7  ;;  %v7103_v18 = vld [vmem:[#allocation51_spill] sm:$0xff]  ;;  %v7110_v7 = vld [vmem:[#allocation16_spill] sm:$0xff] }
 0x19b   :  { %4929 = vmatprep.subr.mxu1 %v6980_v13  ;;  %4903 = vmatpush3.msra.mxu0 %v5539_v63  ;;  %v289_v53 = vadd.f32 %v287_v56, %v263_v46  ;;  %v345_v27 = vmul.f32 %v6229_v21, %v7103_v18  ;;  %v7111_v46 = vld [vmem:[#allocation17_spill] sm:$0xff]  ;;  %v7112_v56 = vld [vmem:[#allocation20_spill] sm:$0xff] }
 0x19c   :  { %4930 = vmatpush3.msra.mxu1 %v5289_v28  ;;  %4904 = vmatprep.subr.mxu0 %v6980_v13  ;;  %v7119_v18 = vld [vmem:[#allocation48_spill] sm:$0xff] }
 0x19d   :  { %4931 = vmatprep.subr.mxu1 %v6980_v13  ;;  %4905 = vmatpush3.msra.mxu0 %v5550_v37  ;;  %v299_v55 = vadd.f32 %v298_v59, %v289_v53  ;;  %v347_v30 = vrot.slane %v345_v27, 2 }
 0x19e   :  { %4932 = vmatpush3.msra.mxu1 %v5318_v39  ;;  %4906 = vmatprep.subr.mxu0 %v6980_v13 }
 0x19f   :  { %4933 = vmatprep.subr.mxu1 %v6980_v13  ;;  %4907 = vmatpush3.msra.mxu0 %v5553_v42 }
 0x1a0   :  { %4934 = vmatpush3.msra.mxu1 %v5328_v43  ;;  %v1628_v3 = vpop.f32.mrf.mxu1  ;;  %4908 = vmatprep.subr.mxu0 %v6980_v13 }
 0x1a1   :  { %4935 = vmatprep.subr.mxu1 %v6980_v13  ;;  %v6570_v52 = vadd.f32 %v1628_v3, %v1542_v61  ;;  %4909 = vmatpush3.msra.mxu0 %v5560_v36  ;;  %v322_v61 = vrot.slane %v320_v48, 1  ;;  %v7113_v3 = vld [vmem:[#allocation24_spill] sm:$0xff]  ;;  %v7116_v48 = vld [vmem:[#allocation31_spill] sm:$0xff] }
 0x1a2   :  { %4910 = vmatprep.mubr.msk.f32.mxu0 %vm5179_vm0, %v6980_v13  ;;  %v4527_v35 = vpop.f32.mrf.mxu1  ;;  %4936 = vmatpush3.msra.mxu1 %v5334_v45 }
 0x1a3   :  { %4911 = vmatmul.mubr.f32.vlgmr.msra.gmra.mxu0 %v6353_v47  ;;  %v6583_v1 = vmul.f32 %v6570_v52, %v6307_v20  ;;  %4937 = vmatprep.subr.mxu1 %v6980_v13  ;;  %v324_v16 = vadd.f32 %v322_v61, %v299_v55  ;;  %v7114_v35 = vld [vmem:[#allocation26_spill] sm:$0xff]  ;;  %v7117_v55 = vld [vmem:[#allocation45_spill] sm:$0xff]  ;;  %v7118_v61 = vld [vmem:[#allocation47_spill] sm:$0xff] }
 0x1a4   :  { %4948 = vmatprep.subr.mxu0 %v6980_v13  ;;  %4938 = vmatpush3.msra.mxu1 %v5380_v58 }
 0x1a5   :  { %4949 = vmatpush3.msra.mxu0 %v5216_v4  ;;  %4939 = vmatprep.subr.mxu1 %v6980_v13  ;;  %v349_v21 = vadd.f32 %v347_v30, %v324_v16  ;;  %v7120_v30 = vld [vmem:[#allocation50_spill] sm:$0xff] }
 0x1a6   :  { %4950 = vmatprep.subr.mxu0 %v6980_v13  ;;  %4940 = vmatpush3.msra.mxu1 %v5386_v60 }
 0x1a7   :  { %4951 = vmatpush3.msra.mxu0 %v5218_v5  ;;  %4941 = vmatprep.subr.mxu1 %v6980_v13 }
 0x1a8   :  { %4952 = vmatprep.subr.mxu0 %v6980_v13  ;;  %4942 = vmatpush3.msra.mxu1 %v5432_v26 }
 0x1a9   :  { %4953 = vmatpush3.msra.mxu0 %v5220_v6  ;;  %4943 = vmatprep.subr.mxu1 %v6980_v13 }
 0x1aa   :  { %4954 = vmatprep.subr.mxu0 %v6980_v13  ;;  %4944 = vmatpush3.msra.mxu1 %v5498_v51 }
 0x1ab   :  { %4945 = vmatprep.mubr.msk.f32.mxu1 %vm5179_vm0, %v6980_v13  ;;  %4955 = vmatpush3.msra.mxu0 %v5232_v10 }
 0x1ac   :  { %4946 = vmatmul.mubr.f32.vlgmr.msra.gmra.mxu1 %v6353_v47  ;;  %4956 = vmatprep.subr.mxu0 %v6980_v13  ;;  %v6618_v47 = vand.u32 4294901760, %v349_v21 }
 0x1ad   :  { %4983 = vmatprep.subr.mxu1 %v6980_v13  ;;  %4957 = vmatpush3.msra.mxu0 %v5234_v11 }
 0x1ae   :  { %4984 = vmatpush3.msra.mxu1 %v7009_v49  ;;  %4958 = vmatprep.subr.mxu0 %v6980_v13  ;;  %v6629_v49 = vsub.f32 %v349_v21, %v6618_v47 }
 0x1af   :  { %4985 = vmatprep.subr.mxu1 %v6980_v13  ;;  %4959 = vmatpush3.msra.mxu0 %v5236_v12 }
 0x1b0   :  { %4986 = vmatpush3.msra.mxu1 %v7010_v57  ;;  %4960 = vmatprep.subr.mxu0 %v6980_v13 }
 0x1b1   :  { %4987 = vmatprep.subr.mxu1 %v6980_v13  ;;  %4961 = vmatpush3.msra.mxu0 %v5255_v17 }
 0x1b2   :  { %4988 = vmatpush3.msra.mxu1 %v7011_v24  ;;  %4962 = vmatprep.subr.mxu0 %v6980_v13 }
 0x1b3   :  { %4989 = vmatprep.subr.mxu1 %v6980_v13  ;;  %4963 = vmatpush3.msra.mxu0 %v5280_v25 }
 0x1b4   :  { %4990 = vmatpush3.msra.mxu1 %v7012_v22  ;;  %4964 = vmatprep.subr.mxu0 %v6980_v13  ;;  %v2997_v22 = vand.u32 4294901760, %v6629_v49 }
 0x1b5   :  { %4991 = vmatprep.subr.mxu1 %v6980_v13  ;;  %4965 = vmatpush3.msra.mxu0 %v5289_v28 }
 0x1b6   :  { %4992 = vmatpush3.msra.mxu1 %v7013_v23  ;;  %4966 = vmatprep.subr.mxu0 %v6980_v13 }
 0x1b7   :  { %4993 = vmatprep.subr.mxu1 %v6980_v13  ;;  %4967 = vmatpush3.msra.mxu0 %v5318_v39 }
 0x1b8   :  { %4994 = vmatpush3.msra.mxu1 %v7014_v2  ;;  %4968 = vmatprep.subr.mxu0 %v6980_v13  ;;  %v7106_v2 = vld [vmem:[#allocation8_spill] sm:$0xff] }
 0x1b9   :  { %4995 = vmatprep.subr.mxu1 %v6980_v13  ;;  %4969 = vmatpush3.msra.mxu0 %v5328_v43 }
 0x1ba   :  { %4996 = vmatpush3.msra.mxu1 %v5442_v33  ;;  %v1719_v57 = vpop.f32.mrf.mxu0  ;;  %4970 = vmatprep.subr.mxu0 %v6980_v13  ;;  %v2998_v33 = vsub.f32 %v6629_v49, %v2997_v22 }
 0x1bb   :  { %4997 = vmatprep.subr.mxu1 %v6980_v13  ;;  %4971 = vmatpush3.msra.mxu0 %v5334_v45 }
 0x1bc   :  { %4998 = vmatpush3.msra.mxu1 %v5444_v34  ;;  %v4562_v24 = vpop.f32.mrf.mxu0  ;;  %4972 = vmatprep.subr.mxu0 %v6980_v13  ;;  %v2999_v34 = vand.u32 4294901760, %v2998_v33  ;;  %v7123_v33 = vld [vmem:[#allocation13_spill] sm:$0xff] }
 0x1bd   :  { %4999 = vmatprep.subr.mxu1 %v6980_v13  ;;  %4973 = vmatpush3.msra.mxu0 %v5380_v58  ;;  %v7122_v24 = vld [vmem:[#allocation12_spill] sm:$0xff] }
 0x1be   :  { %5000 = vmatpush3.msra.mxu1 %v5450_v38  ;;  %4974 = vmatprep.subr.mxu0 %v6980_v13 }
 0x1bf   :  { %5001 = vmatprep.subr.mxu1 %v6980_v13  ;;  %4975 = vmatpush3.msra.mxu0 %v5386_v60 }
 0x1c0   :  { %5002 = vmatpush3.msra.mxu1 %v5505_v41  ;;  %4976 = vmatprep.subr.mxu0 %v6980_v13 }
 0x1c1   :  { %5003 = vmatprep.subr.mxu1 %v6980_v13  ;;  %4977 = vmatpush3.msra.mxu0 %v5432_v26 }
 0x1c2   :  { %5004 = vmatpush3.msra.mxu1 %v5510_v8  ;;  %v1870_v38 = vpop.f32.mrf.mxu1  ;;  %4978 = vmatprep.subr.mxu0 %v6980_v13  ;;  %v7105_v8 = vld [vmem:[#allocation52_spill] sm:$0xff] }
 0x1c3   :  { %5005 = vmatprep.subr.mxu1 %v6980_v13  ;;  %v1871_v23 = vadd.f32 %v1870_v38, %v1719_v57  ;;  %4979 = vmatpush3.msra.mxu0 %v5498_v51  ;;  %v7121_v57 = vld [vmem:[#allocation11_spill] sm:$0xff] }
 0x1c4   :  { %5006 = vmatpush3.msra.mxu1 %v5512_v31  ;;  %v4597_v41 = vpop.f32.mrf.mxu1  ;;  %4980 = vmatprep.mubr.msk.f32.mxu0 %vm5179_vm0, %v6980_v13  ;;  %v7104_v31 = vld [vmem:[#allocation7_spill] sm:$0xff] }
 0x1c5   :  { %5007 = vmatprep.subr.mxu1 %v6980_v13  ;;  %5018 = vmatprep.subr.mxu0 %v6980_v13  ;;  %v7125_v38 = vld [vmem:[#allocation15_spill] sm:$0xff] }
 0x1c6   :  { %4981 = vmatmul.mubr.f32.vlgmr.msra.gmra.mxu0 %v2999_v34  ;;  %5008 = vmatpush3.msra.mxu1 %v5571_v0  ;;  %v7109_v0 = vld [vmem:[#allocation10_spill] sm:$0xff] }
 0x1c7   :  { %5019 = vmatpush3.msra.mxu0 %v5250_v15  ;;  %5009 = vmatprep.subr.mxu1 %v6980_v13  ;;  %v7107_v15 = vld [vmem:[#allocation53_spill] sm:$0xff]  ;;  %v7124_v34 = vld [vmem:[#allocation14_spill] sm:$0xff] }
 0x1c8   :  { %5020 = vmatprep.subr.mxu0 %v6980_v13  ;;  %5010 = vmatpush3.msra.mxu1 %v5577_v19  ;;  %v7108_v19 = vld [vmem:[#allocation9_spill] sm:$0xff] }
 0x1c9   :  { %5021 = vmatpush3.msra.mxu0 %v7104_v31  ;;  %5011 = vmatprep.subr.mxu1 %v6980_v13 }
 0x1ca   :  { %5022 = vmatprep.subr.mxu0 %v6980_v13  ;;  %5012 = vmatpush3.msra.mxu1 %v7105_v8 }
 0x1cb   :  { %5023 = vmatpush3.msra.mxu0 %v7106_v2  ;;  %5013 = vmatprep.subr.mxu1 %v6980_v13  ;;  %v3562_v2 = vstv %s19_s9 }
 0x1cc   :  { %5024 = vmatprep.subr.mxu0 %v6980_v13  ;;  %5014 = vmatpush3.msra.mxu1 %v7107_v15 }
 0x1cd   :  { %5015 = vmatprep.mubr.msk.f32.mxu1 %vm5179_vm0, %v6980_v13  ;;  %5025 = vmatpush3.msra.mxu0 %v7108_v19 }
 0x1ce   :  { %5016 = vmatmul.mubr.f32.vlgmr.msra.gmra.mxu1 %v6618_v47  ;;  %5026 = vmatprep.subr.mxu0 %v6980_v13 }
 0x1cf   :  { %5053 = vmatprep.subr.mxu1 %v6980_v13  ;;  %5027 = vmatpush3.msra.mxu0 %v7109_v0 }
 0x1d0   :  { %5054 = vmatpush3.msra.mxu1 %v5216_v4  ;;  %5028 = vmatprep.subr.mxu0 %v6980_v13 }
 0x1d1   :  { %5055 = vmatprep.subr.mxu1 %v6980_v13  ;;  %5029 = vmatpush3.msra.mxu0 %v7110_v7 }
 0x1d2   :  { %5056 = vmatpush3.msra.mxu1 %v5218_v5  ;;  %5030 = vmatprep.subr.mxu0 %v6980_v13 }
 0x1d3   :  { %5057 = vmatprep.subr.mxu1 %v6980_v13  ;;  %5031 = vmatpush3.msra.mxu0 %v7111_v46 }
 0x1d4   :  { %5058 = vmatpush3.msra.mxu1 %v5220_v6  ;;  %5032 = vmatprep.subr.mxu0 %v6980_v13 }
 0x1d5   :  { %5059 = vmatprep.subr.mxu1 %v6980_v13  ;;  %5033 = vmatpush3.msra.mxu0 %v7112_v56 }
 0x1d6   :  { %5060 = vmatpush3.msra.mxu1 %v5232_v10  ;;  %5034 = vmatprep.subr.mxu0 %v6980_v13 }
 0x1d7   :  { %5061 = vmatprep.subr.mxu1 %v6980_v13  ;;  %5035 = vmatpush3.msra.mxu0 %v7113_v3 }
 0x1d8   :  { %5062 = vmatpush3.msra.mxu1 %v5234_v11  ;;  %5036 = vmatprep.subr.mxu0 %v6980_v13 }
 0x1d9   :  { %5063 = vmatprep.subr.mxu1 %v6980_v13  ;;  %5037 = vmatpush3.msra.mxu0 %v7114_v35 }
 0x1da   :  { %5064 = vmatpush3.msra.mxu1 %v5236_v12  ;;  %5038 = vmatprep.subr.mxu0 %v6980_v13 }
 0x1db   :  { %5065 = vmatprep.subr.mxu1 %v6980_v13  ;;  %v1974_v53 = vpop.f32.mrf.mxu0  ;;  %5039 = vmatpush3.msra.mxu0 %v7115_v29 }
 0x1dc   :  { %5066 = vmatpush3.msra.mxu1 %v5255_v17  ;;  %v1975_v59 = vadd.f32 %v1974_v53, %v1871_v23  ;;  %5040 = vmatprep.subr.mxu0 %v6980_v13 }
 0x1dd   :  { %5067 = vmatprep.subr.mxu1 %v6980_v13  ;;  %v4632_v62 = vpop.f32.mrf.mxu0  ;;  %5041 = vmatpush3.msra.mxu0 %v7116_v48 }
 0x1de   :  { %5068 = vmatpush3.msra.mxu1 %v5280_v25  ;;  %5042 = vmatprep.subr.mxu0 %v6980_v13 }
 0x1df   :  { %5069 = vmatprep.subr.mxu1 %v6980_v13  ;;  %5043 = vmatpush3.msra.mxu0 %v7117_v55 }
 0x1e0   :  { %5070 = vmatpush3.msra.mxu1 %v5289_v28  ;;  %5044 = vmatprep.subr.mxu0 %v6980_v13 }
 0x1e1   :  { %5071 = vmatprep.subr.mxu1 %v6980_v13  ;;  %5045 = vmatpush3.msra.mxu0 %v7118_v61 }
 0x1e2   :  { %5072 = vmatpush3.msra.mxu1 %v5318_v39  ;;  %5046 = vmatprep.subr.mxu0 %v6980_v13 }
 0x1e3   :  { %5073 = vmatprep.subr.mxu1 %v6980_v13  ;;  %5047 = vmatpush3.msra.mxu0 %v7119_v18 }
 0x1e4   :  { %5074 = vmatpush3.msra.mxu1 %v5328_v43  ;;  %v2063_v27 = vpop.f32.mrf.mxu1  ;;  %5048 = vmatprep.subr.mxu0 %v6980_v13 }
 0x1e5   :  { %5075 = vmatprep.subr.mxu1 %v6980_v13  ;;  %v2064_v16 = vadd.f32 %v2063_v27, %v1975_v59  ;;  %5049 = vmatpush3.msra.mxu0 %v7120_v30 }
 0x1e6   :  { %5050 = vmatprep.mubr.msk.f32.mxu0 %vm5179_vm0, %v6980_v13  ;;  %v4667_v21 = vpop.f32.mrf.mxu1  ;;  %5076 = vmatpush3.msra.mxu1 %v5334_v45 }
 0x1e7   :  { %5051 = vmatmul.mubr.f32.vlgmr.msra.gmra.mxu0 %v6629_v49  ;;  %5077 = vmatprep.subr.mxu1 %v6980_v13 }
 0x1e8   :  { %5088 = vmatprep.subr.mxu0 %v6980_v13  ;;  %5078 = vmatpush3.msra.mxu1 %v5380_v58 }
 0x1e9   :  { %5089 = vmatpush3.msra.mxu0 %v7121_v57  ;;  %5079 = vmatprep.subr.mxu1 %v6980_v13 }
 0x1ea   :  { %5090 = vmatprep.subr.mxu0 %v6980_v13  ;;  %5080 = vmatpush3.msra.mxu1 %v5386_v60 }
 0x1eb   :  { %5091 = vmatpush3.msra.mxu0 %v7122_v24  ;;  %5081 = vmatprep.subr.mxu1 %v6980_v13 }
 0x1ec   :  { %5092 = vmatprep.subr.mxu0 %v6980_v13  ;;  %5082 = vmatpush3.msra.mxu1 %v5432_v26 }
 0x1ed   :  { %5093 = vmatpush3.msra.mxu0 %v7123_v33  ;;  %5083 = vmatprep.subr.mxu1 %v6980_v13 }
 0x1ee   :  { %5094 = vmatprep.subr.mxu0 %v6980_v13  ;;  %5084 = vmatpush3.msra.mxu1 %v5498_v51 }
 0x1ef   :  { %5085 = vmatprep.mubr.msk.f32.mxu1 %vm5179_vm0, %v6980_v13  ;;  %5095 = vmatpush3.msra.mxu0 %v7124_v34 }
 0x1f0   :  { %5086 = vmatmul.mubr.f32.vlgmr.msra.gmra.mxu1 %v2997_v22  ;;  %5096 = vmatprep.subr.mxu0 %v6980_v13 }
 0x1f1   :  { %5123 = vmatprep.subr.mxu1 %v6980_v13  ;;  %5097 = vmatpush3.msra.mxu0 %v7125_v38 }
 0x1f2   :  { %5124 = vmatpush3.msra.mxu1 %v5216_v4  ;;  %5098 = vmatprep.subr.mxu0 %v6980_v13 }
 0x1f3   :  { %5125 = vmatprep.subr.mxu1 %v6980_v13  ;;  %5099 = vmatpush3.msra.mxu0 %v5321_v40 }
 0x1f4   :  { %5126 = vmatpush3.msra.mxu1 %v5218_v5  ;;  %5100 = vmatprep.subr.mxu0 %v6980_v13 }
 0x1f5   :  { %5127 = vmatprep.subr.mxu1 %v6980_v13  ;;  %5101 = vmatpush3.msra.mxu0 %v5331_v44 }
 0x1f6   :  { %5128 = vmatpush3.msra.mxu1 %v5220_v6  ;;  %5102 = vmatprep.subr.mxu0 %v6980_v13 }
 0x1f7   :  { %5129 = vmatprep.subr.mxu1 %v6980_v13  ;;  %5103 = vmatpush3.msra.mxu0 %v7001_v54 }
 0x1f8   :  { %5130 = vmatpush3.msra.mxu1 %v5232_v10  ;;  %5104 = vmatprep.subr.mxu0 %v6980_v13 }
 0x1f9   :  { %5131 = vmatprep.subr.mxu1 %v6980_v13  ;;  %5105 = vmatpush3.msra.mxu0 %v7002_v9 }
 0x1fa   :  { %5132 = vmatpush3.msra.mxu1 %v5234_v11  ;;  %5106 = vmatprep.subr.mxu0 %v6980_v13  ;;  %v3555_v11 = vmul.f32 %v6307_v20, %v6307_v20 }
 0x1fb   :  { %5133 = vmatprep.subr.mxu1 %v6980_v13  ;;  %5107 = vmatpush3.msra.mxu0 %v7003_v32 }
 0x1fc   :  { %5134 = vmatpush3.msra.mxu1 %v5236_v12  ;;  %5108 = vmatprep.subr.mxu0 %v6980_v13 }
 0x1fd   :  { %5135 = vmatprep.subr.mxu1 %v6980_v13  ;;  %v2182_v4 = vpop.f32.mrf.mxu0  ;;  %5109 = vmatpush3.msra.mxu0 %v7004_v14 }
 0x1fe   :  { %5136 = vmatpush3.msra.mxu1 %v5255_v17  ;;  %v2183_v5 = vadd.f32 %v2182_v4, %v2064_v16  ;;  %5110 = vmatprep.subr.mxu0 %v6980_v13 }
 0x1ff   :  { %5137 = vmatprep.subr.mxu1 %v6980_v13  ;;  %v4702_v6 = vpop.f32.mrf.mxu0  ;;  %5111 = vmatpush3.msra.mxu0 %v7005_v50 }
 0x200   :  { %5138 = vmatpush3.msra.mxu1 %v5280_v25  ;;  %5112 = vmatprep.subr.mxu0 %v6980_v13 }
 0x201   :  { %5139 = vmatprep.subr.mxu1 %v6980_v13  ;;  %5113 = vmatpush3.msra.mxu0 %v5539_v63 }
 0x202   :  { %5140 = vmatpush3.msra.mxu1 %v5289_v28  ;;  %5114 = vmatprep.subr.mxu0 %v6980_v13 }
 0x203   :  { %5141 = vmatprep.subr.mxu1 %v6980_v13  ;;  %5115 = vmatpush3.msra.mxu0 %v5550_v37 }
 0x204   :  { %5142 = vmatpush3.msra.mxu1 %v5318_v39  ;;  %5116 = vmatprep.subr.mxu0 %v6980_v13 }
 0x205   :  { %5143 = vmatprep.subr.mxu1 %v6980_v13  ;;  %5117 = vmatpush3.msra.mxu0 %v5553_v42 }
 0x206   :  { %5144 = vmatpush3.msra.mxu1 %v5328_v43  ;;  %v2269_v10 = vpop.f32.mrf.mxu1  ;;  %5118 = vmatprep.subr.mxu0 %v6980_v13 }
 0x207   :  { %5145 = vmatprep.subr.mxu1 %v6980_v13  ;;  %v2270_v12 = vadd.f32 %v2269_v10, %v2183_v5  ;;  %5119 = vmatpush3.msra.mxu0 %v5560_v36 }
 0x208   :  { %5120 = vmatprep.mubr.msk.f32.mxu0 %vm5179_vm0, %v6980_v13  ;;  %v4737_v17 = vpop.f32.mrf.mxu1  ;;  %5146 = vmatpush3.msra.mxu1 %v5334_v45 }
 0x209   :  { %5121 = vmatmul.mubr.f32.vlgmr.msra.gmra.mxu0 %v6618_v47  ;;  %v3556_v25 = vsub.f32 %v2270_v12, %v3555_v11  ;;  %5147 = vmatprep.subr.mxu1 %v6980_v13 }
 0x20a   :  { %5155 = vmatprep.mubr.msk.f32.mxu1 %vm5179_vm0, %v6980_v13  ;;  %5148 = vmatpush3.msra.mxu1 %v5380_v58 }
 0x20b   :  { %5149 = vmatprep.subr.mxu1 %v6980_v13 }
 0x20c   :  { %5150 = vmatpush3.msra.mxu1 %v5386_v60 }
 0x20d   :  { %5151 = vmatprep.subr.mxu1 %v6980_v13 }
 0x20e   :  { %5152 = vmatpush3.msra.mxu1 %v5432_v26 }
 0x20f   :  { %5153 = vmatprep.subr.mxu1 %v6980_v13  ;;  %v3557_v13 = vmul.f32 %v6570_v52, %v6570_v52 }
 0x210   :  { %5154 = vmatpush3.msra.mxu1 %v5498_v51 }
 0x211   :  { %5156 = vmatmul.mubr.f32.vlgmr.msra.gmra.mxu1 %v6618_v47 }
 0x220   :  { %v2360_v28 = vpop.f32.mrf.mxu0 }
 0x222   :  { %v4772_v39 = vpop.f32.mrf.mxu0 }
 0x228   :  { %v2511_v40 = vpop.f32.mrf.mxu1 }
 0x229   :  { %v2512_v43 = vadd.f32 %v2511_v40, %v2360_v28 }
 0x22a   :  { %v4807_v44 = vpop.f32.mrf.mxu1 }
 0x241   :  { %v2615_v45 = vpop.f32.mrf.mxu0 }
 0x242   :  { %v2616_v58 = vadd.f32 %v2615_v45, %v2512_v43 }
 0x243   :  { %v4842_v50 = vpop.f32.mrf.mxu0 }
 0x24a   :  { %v2704_v63 = vpop.f32.mrf.mxu1 }
 0x24b   :  { %v2705_v60 = vadd.f32 %v2704_v63, %v2616_v58 }
 0x24c   :  { %v4877_v37 = vpop.f32.mrf.mxu1 }
 0x263   :  { %v2823_v42 = vpop.f32.mrf.mxu0 }
 0x264   :  { %v2824_v36 = vadd.f32 %v2823_v42, %v2705_v60 }
 0x265   :  { %v4912_v26 = vpop.f32.mrf.mxu0 }
 0x26c   :  { %v2910_v32 = vpop.f32.mrf.mxu1 }
 0x26d   :  { %v2911_v51 = vadd.f32 %v2910_v32, %v2824_v36 }
 0x26e   :  { %v4947_v54 = vpop.f32.mrf.mxu1 }
 0x26f   :  { %v3558_v9 = vsub.f32 %v2911_v51, %v3557_v13 }
 0x271   :  { %v3564_v14 = vadd.f32 %v3558_v9, %v3556_v25 }
 0x273   :  { %v3565_v15 = vadd.f32 %v3564_v14, %v3562_v2 }
 0x275   :  { %5163 = vrcp.f32 %v3565_v15 }
 0x282   :  { %v5164_v46 = vpop.eup %5163 }
 0x283   :  { %v3567_v35 = vmul.f32 %v5164_v46, %v3565_v15 }
 0x285   :  { %v3568_v48 = vsub.f32 2.0, %v3567_v35 }
 0x286   :  { %v3001_v20 = vpop.f32.mrf.mxu0 }
 0x287   :  { %v3569_v18 = vmul.f32 %v5164_v46, %v3568_v48 }
 0x288   :  { %v4982_v47 = vpop.f32.mrf.mxu0 }
 0x28e   :  { %v3152_v49 = vpop.f32.mrf.mxu1 }
 0x28f   :  { %v3153_v19 = vadd.f32 %v3152_v49, %v3001_v20 }
 0x290   :  { %v5017_v22 = vpop.f32.mrf.mxu1 }
 0x2a7   :  { %v3256_v23 = vpop.f32.mrf.mxu0 }
 0x2a8   :  { %v3257_v7 = vadd.f32 %v3256_v23, %v3153_v19 }
 0x2a9   :  { %v5052_v41 = vpop.f32.mrf.mxu0 }
 0x2b0   :  { %v3345_v31 = vpop.f32.mrf.mxu1 }
 0x2b1   :  { %v3346_v56 = vadd.f32 %v3345_v31, %v3257_v7 }
 0x2b2   :  { %v5087_v8 = vpop.f32.mrf.mxu1 }
 0x2c9   :  { %v3464_v52 = vpop.f32.mrf.mxu0 }
 0x2ca   :  { %v3465_v3 = vadd.f32 %v3464_v52, %v3346_v56 }
 0x2cb   :  { %v5122_v0 = vpop.f32.mrf.mxu0 }
 0x2d1   :  { %v3551_v53 = vpop.f32.mrf.mxu1 }
 0x2d2   :  { %v3552_v29 = vadd.f32 %v3551_v53, %v3465_v3 }
 0x2d3   :  { %v5157_v59 = vpop.f32.mrf.mxu1 }
 0x2d4   :  { %v3560_v62 = vsub.f32 %v3552_v29, %v6583_v1 }
 0x2d6   :  { %v3561_v55 = vmul.f32 2.0, %v3560_v62 }
 0x2d8   :  { %v3563_v61 = vadd.f32 %v3562_v2, %v3561_v55 }
 0x2da   :  { %v3570_v27 = vmul.f32 %v3569_v18, %v3563_v61 }
 0x2dc   :  { %v3572_v16 = vsel %vm3571_vm6, %v3570_v27, 0.0 }
 0x2dd   :  { %3573 = vadd.xlane.f32.xlu0 %v3572_v16 }
 0x366   :  { %v3574_v30 = vpop.xlane.xlu0 %3573 }
 0x367   :  { %v3575_v21 = vrot.slane %v3574_v30, 4 }
 0x369   :  { %v3576_v57 = vadd.f32 %v3575_v21, %v3574_v30 }
 0x36b   :  { %v3577_v24 = vrot.slane %v3576_v57, 2 }
 0x36d   :  { %v3578_v33 = vadd.f32 %v3577_v24, %v3576_v57 }
 0x36f   :  { %v3579_v34 = vrot.slane %v3578_v33, 1 }
 0x371   :  { %v3580_v38 = vadd.f32 %v3579_v34, %v3578_v33 }
 0x373   :  { %5158 = vpush %v3580_v38 }
 0x3a4   :  { %s5159_s0 = spop %5158 }
 0x3a5   :  { %3584 = sst [smem:[#allocation4]] %s5159_s0 }
 0x3a6   :  { %3592 = dma.smem_to_hbm %s5180_s10, 16, %s6832_s4, [#allocation5]  }
 0x3a7   :  { %5176 = dma.done.wait [#allocation5], 16  }
 0x3a8   :  { %5177 = vsyncadd [#allocation5], 4294967280 }
 0x3a9   :  { %3596 = sfence }
 0x3aa   :  { %3597 = vsyncpa [#allocation5], 1 }

</bundles_post_ra>
